<compile_context>
chip_gen: v6e
topology: v6e:2x2x1
jax: 0.10.0
libtpu: 0.0.40
codegen_flags: <defaults>
</compile_context>

<pallas_src>
import jax
import jax.numpy as jnp
from jax.experimental import pallas as pl
from jax.experimental.pallas import tpu as pltpu

# --- model hyper-params (from the module's dicts / config) --------------------
BASE_MODEL_OUT_CH = 512          # out_channel['resnet18']
NUM_CLASSES = 4                  # config['num_subtypes']
CONCAT_POOL = True               # config['concat_pool'] -> num_channel = 2*512
HIDDEN = 512                     # Linear(num_channel, 512)
BN_EPS = 1e-5
B_TILE = 64                      # batch tile (fits double-buffered in v7x VMEM)


def head_kernel(x_ref,            # (bt, HW, C)  feature tile, C on lanes, f32
                w1m_ref,          # (C, HIDDEN)  bf16, BN1-folded W1 rows for max-pool
                w1a_ref,          # (C, HIDDEN)  bf16, BN1-folded W1 rows for avg-pool
                b1_ref,           # (1, HIDDEN)  f32, BN1 offset folded in
                w2_ref,           # (HIDDEN, NUM_CLASSES) f32, BN2 folded in
                b2_ref,           # (1, NUM_CLASSES) f32
                out_ref):         # (bt, NUM_CLASSES) f32
    x = x_ref[...]                                       # (bt, HW, C) f32

    # AdaptiveConcatPool2d(1): reduce over the spatial (sublane) axis in f32,
    # then cast the pooled features to bf16 for the MXU.
    xm = jnp.max(x, axis=1).astype(jnp.bfloat16)         # (bt, C)  max-pool
    xa = jnp.mean(x, axis=1).astype(jnp.bfloat16)        # (bt, C)  avg-pool

    # concat([mp, ap]) @ W1fold  ==  xm @ W1fold[:C] + xa @ W1fold[C:]
    # (BN1 + Dropout(eval) already folded into the weights/bias).
    h = (jnp.dot(xm, w1m_ref[...], preferred_element_type=jnp.float32)
         + jnp.dot(xa, w1a_ref[...], preferred_element_type=jnp.float32)
         + b1_ref[...])
    h = jnp.maximum(h, 0.0)                              # ReLU

    # BN2 + Dropout(eval) folded into w2/b2.  Narrow (bt, 4) store is a
    # masked vst of a handful of elements -> negligible.
    out_ref[...] = (jnp.dot(h, w2_ref[...], preferred_element_type=jnp.float32)
                    + b2_ref[...])


def fold_params(params):
    """Fold eval-mode BatchNorms into the adjacent Linear layers (f32 math).

    Call ONCE per checkpoint (hoisted out of the per-forward path)."""
    # BN1 -> affine y = x*a1 + c1, folded into Linear1.
    a1 = params['bn1_gamma'] / jnp.sqrt(params['bn1_var'] + BN_EPS)
    c1 = params['bn1_beta'] - params['bn1_mean'] * a1
    w1t = jnp.transpose(params['lin1_w'])                # (2C, HIDDEN)
    w1 = (a1[:, None] * w1t).astype(jnp.bfloat16)        # bf16 weights
    b1 = (c1 @ w1t + params['lin1_b'])[None, :].astype(jnp.float32)
    w1m = w1[:BASE_MODEL_OUT_CH]                         # rows hit by max-pool feats
    w1a = w1[BASE_MODEL_OUT_CH:]                         # rows hit by avg-pool feats

    # BN2 -> affine, folded into Linear2.  Kept UNPADDED: (HIDDEN, 4).
    a2 = params['bn2_gamma'] / jnp.sqrt(params['bn2_var'] + BN_EPS)
    c2 = params['bn2_beta'] - params['bn2_mean'] * a2
    w2t = jnp.transpose(params['lin2_w'])                # (HIDDEN, NUM_CLASSES)
    w2 = (a2[:, None] * w2t).astype(jnp.float32)
    b2 = (c2 @ w2t + params['lin2_b'])[None, :].astype(jnp.float32)
    return w1m, w1a, b1, w2, b2


def model_long_head(feature_nhwc, folded, *, b_tile=B_TILE):
    """feature_nhwc: (B, H, W, C) float32 backbone feature map (NHWC so the
    channel axis is already lane-dense; no transpose / extra HBM pass)."""
    B, H, W, C = feature_nhwc.shape
    HW = H * W
    x = feature_nhwc.reshape(B, HW, C)                   # free reshape

    w1m, w1a, b1, w2, b2 = folded

    bt = min(b_tile, B)
    n_tiles = pl.cdiv(B, bt)
    Bp = n_tiles * bt
    if Bp != B:
        x = jnp.pad(x, ((0, Bp - B), (0, 0), (0, 0)))

    out = pl.pallas_call(
        head_kernel,
        out_shape=jax.ShapeDtypeStruct((Bp, NUM_CLASSES), jnp.float32),
        grid=(n_tiles,),
        in_specs=[
            pl.BlockSpec((bt, HW, C), lambda i: (i, 0, 0)),          # x tiles
            pl.BlockSpec((C, HIDDEN), lambda i: (0, 0)),             # weights stay
            pl.BlockSpec((C, HIDDEN), lambda i: (0, 0)),             #  VMEM-resident
            pl.BlockSpec((1, HIDDEN), lambda i: (0, 0)),
            pl.BlockSpec((HIDDEN, NUM_CLASSES), lambda i: (0, 0)),
            pl.BlockSpec((1, NUM_CLASSES), lambda i: (0, 0)),
        ],
        out_specs=pl.BlockSpec((bt, NUM_CLASSES), lambda i: (i, 0)),
        compiler_params=pltpu.CompilerParams(
            dimension_semantics=("parallel",),            # megacore on v7x
            vmem_limit_bytes=48 * 1024 * 1024,            # 2x 8MiB x-tiles + weights
        ),
    )(x, w1m, w1a, b1, w2, b2)
    return out[:B]


def make_params(key):
    ks = jax.random.split(key, 12)
    C2 = 2 * BASE_MODEL_OUT_CH if CONCAT_POOL else BASE_MODEL_OUT_CH
    return {
        'bn1_gamma': 1.0 + 0.1 * jax.random.normal(ks[0], (C2,), jnp.float32),
        'bn1_beta':  0.05 * jax.random.normal(ks[1], (C2,), jnp.float32),
        'bn1_mean':  0.1 * jax.random.normal(ks[2], (C2,), jnp.float32),
        'bn1_var':   jnp.abs(jax.random.normal(ks[3], (C2,), jnp.float32)) + 0.5,
        'lin1_w':    0.02 * jax.random.normal(ks[4], (HIDDEN, C2), jnp.float32),
        'lin1_b':    0.01 * jax.random.normal(ks[5], (HIDDEN,), jnp.float32),
        'bn2_gamma': 1.0 + 0.1 * jax.random.normal(ks[6], (HIDDEN,), jnp.float32),
        'bn2_beta':  0.05 * jax.random.normal(ks[7], (HIDDEN,), jnp.float32),
        'bn2_mean':  0.1 * jax.random.normal(ks[8], (HIDDEN,), jnp.float32),
        'bn2_var':   jnp.abs(jax.random.normal(ks[9], (HIDDEN,), jnp.float32)) + 0.5,
        'lin2_w':    0.05 * jax.random.normal(ks[10], (NUM_CLASSES, HIDDEN), jnp.float32),
        'lin2_b':    0.01 * jax.random.normal(ks[11], (NUM_CLASSES,), jnp.float32),
    }


def ref_forward(feature_nhwc, params):
    """Pure-JAX f32 reference mirroring the PyTorch 'long' head in eval mode."""
    mp = jnp.max(feature_nhwc, axis=(1, 2))              # spatial pool (NHWC)
    ap = jnp.mean(feature_nhwc, axis=(1, 2))
    f = jnp.concatenate([mp, ap], axis=1)
    f = ((f - params['bn1_mean']) / jnp.sqrt(params['bn1_var'] + BN_EPS)
         * params['bn1_gamma'] + params['bn1_beta'])
    h = f @ params['lin1_w'].T + params['lin1_b']
    h = jnp.maximum(h, 0.0)
    h = ((h - params['bn2_mean']) / jnp.sqrt(params['bn2_var'] + BN_EPS)
         * params['bn2_gamma'] + params['bn2_beta'])
    return h @ params['lin2_w'].T + params['lin2_b']


if __name__ == "__main__":
    key = jax.random.PRNGKey(0)
    k_x, k_p = jax.random.split(key)

    # resnet18 backbone feature map, NHWC (what a JAX backbone would emit).
    B, H, W, C = 2, 8, 8, BASE_MODEL_OUT_CH
    feature = jax.random.normal(k_x, (B, H, W, C), jnp.float32)
    params = make_params(k_p)

    # Fold BNs into the Linears ONCE (hoisted out of the per-call path).
    folded = jax.tree_util.tree_map(jax.block_until_ready, fold_params(params))

    out = jax.block_until_ready(model_long_head(feature, folded))
    ref = jax.block_until_ready(ref_forward(feature, params))

    assert out.shape == (B, NUM_CLASSES)
    # bf16 pooled features / W1 in the kernel vs f32 reference -> relaxed tol.
    assert jnp.allclose(out, ref, rtol=5e-2, atol=5e-2), (out, ref)

    print("KERNEL_OK")
</pallas_src>

<mosaic_0001>
module attributes {stable_mosaic.version = 11 : i64} {
  func.func @head_kernel(%arg0: i32, %arg1: memref<2x64x512xf32, #tpu.memory_space<vmem>>, %arg2: memref<512x512xbf16, #tpu.memory_space<vmem>>, %arg3: memref<512x512xbf16, #tpu.memory_space<vmem>>, %arg4: memref<1x512xf32, #tpu.memory_space<vmem>>, %arg5: memref<512x4xf32, #tpu.memory_space<vmem>>, %arg6: memref<1x4xf32, #tpu.memory_space<vmem>>, %arg7: memref<2x4xf32, #tpu.memory_space<vmem>>) attributes {dimension_semantics = [#tpu.dimension_semantics<parallel>], iteration_bounds = array<i64: 1>, scalar_prefetch = 0 : i64, scratch_operands = 0 : i64, tpu.core_type = #tpu.core_type<tc>, window_params = [{transform_indices = @transform_0, window_bounds = array<i64: 2, 64, 512>}, {pipeline_mode = #tpu.pipeline_mode<synchronous>, transform_indices = @transform_1, window_bounds = array<i64: 512, 512>}, {pipeline_mode = #tpu.pipeline_mode<synchronous>, transform_indices = @transform_2, window_bounds = array<i64: 512, 512>}, {pipeline_mode = #tpu.pipeline_mode<synchronous>, transform_indices = @transform_3, window_bounds = array<i64: 1, 512>}, {pipeline_mode = #tpu.pipeline_mode<synchronous>, transform_indices = @transform_4, window_bounds = array<i64: 512, 4>}, {pipeline_mode = #tpu.pipeline_mode<synchronous>, transform_indices = @transform_5, window_bounds = array<i64: 1, 4>}, {transform_indices = @transform_6, window_bounds = array<i64: 2, 4>}]} {
    %c0 = arith.constant 0 : index
    %c0_0 = arith.constant 0 : index
    %c0_1 = arith.constant 0 : index
    %0 = vector.load %arg1[%c0, %c0_0, %c0_1] : memref<2x64x512xf32, #tpu.memory_space<vmem>>, vector<2x64x512xf32>
    %cst = arith.constant dense<0xFF800000> : vector<2x512xf32>
    %1 = vector.multi_reduction <maximumf>, %0, %cst [1] : vector<2x64x512xf32> to vector<2x512xf32>
    %2 = arith.truncf %1 : vector<2x512xf32> to vector<2x512xbf16>
    %cst_2 = arith.constant dense<0.000000e+00> : vector<2x512xf32>
    %3 = vector.multi_reduction <add>, %0, %cst_2 [1] : vector<2x64x512xf32> to vector<2x512xf32>
    %cst_3 = arith.constant 6.400000e+01 : f32
    %4 = vector.broadcast %cst_3 : f32 to vector<2x512xf32>
    %5 = arith.divf %3, %4 : vector<2x512xf32>
    %6 = arith.truncf %5 : vector<2x512xf32> to vector<2x512xbf16>
    %c0_4 = arith.constant 0 : index
    %c0_5 = arith.constant 0 : index
    %7 = vector.load %arg2[%c0_4, %c0_5] : memref<512x512xbf16, #tpu.memory_space<vmem>>, vector<512x512xbf16>
    %cst_6 = arith.constant dense<0.000000e+00> : vector<2x512xf32>
    %8 = tpu.matmul %2, %7, %cst_6 {dimension_numbers = #tpu.dot_dimension_numbers<[1], [0], [0], [1], [0, 0, 1, 1], [], []>} : vector<2x512xbf16>, vector<512x512xbf16>, vector<2x512xf32> -> vector<2x512xf32>
    %c0_7 = arith.constant 0 : index
    %c0_8 = arith.constant 0 : index
    %9 = vector.load %arg3[%c0_7, %c0_8] : memref<512x512xbf16, #tpu.memory_space<vmem>>, vector<512x512xbf16>
    %cst_9 = arith.constant dense<0.000000e+00> : vector<2x512xf32>
    %10 = tpu.matmul %6, %9, %cst_9 {dimension_numbers = #tpu.dot_dimension_numbers<[1], [0], [0], [1], [0, 0, 1, 1], [], []>} : vector<2x512xbf16>, vector<512x512xbf16>, vector<2x512xf32> -> vector<2x512xf32>
    %11 = arith.addf %8, %10 : vector<2x512xf32>
    %c0_10 = arith.constant 0 : index
    %c0_11 = arith.constant 0 : index
    %12 = vector.load %arg4[%c0_10, %c0_11] : memref<1x512xf32, #tpu.memory_space<vmem>>, vector<1x512xf32>
    %13 = vector.broadcast %12 : vector<1x512xf32> to vector<2x512xf32>
    %14 = arith.addf %11, %13 : vector<2x512xf32>
    %cst_12 = arith.constant 0.000000e+00 : f32
    %15 = vector.broadcast %cst_12 : f32 to vector<2x512xf32>
    %16 = arith.maximumf %14, %15 : vector<2x512xf32>
    %c0_13 = arith.constant 0 : index
    %c0_14 = arith.constant 0 : index
    %17 = vector.load %arg5[%c0_13, %c0_14] : memref<512x4xf32, #tpu.memory_space<vmem>>, vector<512x4xf32>
    %cst_15 = arith.constant dense<0.000000e+00> : vector<2x4xf32>
    %18 = tpu.matmul %16, %17, %cst_15 {dimension_numbers = #tpu.dot_dimension_numbers<[1], [0], [0], [1], [0, 0, 1, 1], [], []>} : vector<2x512xf32>, vector<512x4xf32>, vector<2x4xf32> -> vector<2x4xf32>
    %c0_16 = arith.constant 0 : index
    %c0_17 = arith.constant 0 : index
    %19 = vector.load %arg6[%c0_16, %c0_17] : memref<1x4xf32, #tpu.memory_space<vmem>>, vector<1x4xf32>
    %20 = vector.broadcast %19 : vector<1x4xf32> to vector<2x4xf32>
    %21 = arith.addf %18, %20 : vector<2x4xf32>
    %c0_18 = arith.constant 0 : index
    %c0_19 = arith.constant 0 : index
    %22 = vector.load %arg7[%c0_18, %c0_19] : memref<2x4xf32, #tpu.memory_space<vmem>>, vector<2x4xf32>
    tpu.vector_store %arg7[%c0_18, %c0_19], %21 {strides = array<i32>} : memref<2x4xf32, #tpu.memory_space<vmem>>, vector<2x4xf32>,
    return
  }
  func.func @transform_0(%arg0: i32) -> (i32, i32, i32) {
    %c0_i32 = arith.constant 0 : i32
    %c0_i32_0 = arith.constant 0 : i32
    %c0_i32_1 = arith.constant 0 : i32
    return %arg0, %c0_i32, %c0_i32_0 : i32, i32, i32
  }
  func.func @transform_1(%arg0: i32) -> (i32, i32) {
    %c0_i32 = arith.constant 0 : i32
    %c0_i32_0 = arith.constant 0 : i32
    %c0_i32_1 = arith.constant 0 : i32
    return %c0_i32, %c0_i32_0 : i32, i32
  }
  func.func @transform_2(%arg0: i32) -> (i32, i32) {
    %c0_i32 = arith.constant 0 : i32
    %c0_i32_0 = arith.constant 0 : i32
    %c0_i32_1 = arith.constant 0 : i32
    return %c0_i32, %c0_i32_0 : i32, i32
  }
  func.func @transform_3(%arg0: i32) -> (i32, i32) {
    %c0_i32 = arith.constant 0 : i32
    %c0_i32_0 = arith.constant 0 : i32
    %c0_i32_1 = arith.constant 0 : i32
    return %c0_i32, %c0_i32_0 : i32, i32
  }
  func.func @transform_4(%arg0: i32) -> (i32, i32) {
    %c0_i32 = arith.constant 0 : i32
    %c0_i32_0 = arith.constant 0 : i32
    %c0_i32_1 = arith.constant 0 : i32
    return %c0_i32, %c0_i32_0 : i32, i32
  }
  func.func @transform_5(%arg0: i32) -> (i32, i32) {
    %c0_i32 = arith.constant 0 : i32
    %c0_i32_0 = arith.constant 0 : i32
    %c0_i32_1 = arith.constant 0 : i32
    return %c0_i32, %c0_i32_0 : i32, i32
  }
  func.func @transform_6(%arg0: i32) -> (i32, i32) {
    %c0_i32 = arith.constant 0 : i32
    %c0_i32_0 = arith.constant 0 : i32
    return %arg0, %c0_i32 : i32, i32
  }
}

</mosaic_0001>

<bundles_post_ra>
// kernel: tpu_custom_call.1
= control target key start
LH: loop header
LB: loop body
LE: loop exit
PB: predicated region body
PF: predicated region fallthrough
CT: control target
= control target key end

     0   :  { %11 = vsyncpa [#allocation3], 0  ;;  %s3956_s0 = inlined_call_operand.vmem [shape: f32[2,64,512], index: 0, kind: input, shape index: {}]   ;;  %s3957_s1 = inlined_call_operand.hbm [shape: bf16[512,512], index: 1, kind: input, shape index: {}]   ;;  %s3958_s2 = inlined_call_operand.hbm [shape: bf16[512,512], index: 2, kind: input, shape index: {}]   ;;  %s3959_s3 = inlined_call_operand.vmem [shape: f32[1,512], index: 3, kind: input, shape index: {}]   ;;  %s3960_s4 = inlined_call_operand.vmem [shape: f32[512,4], index: 4, kind: input, shape index: {}]   ;;  %s3961_s5 = inlined_call_operand.vmem [shape: f32[1,4], index: 5, kind: input, shape index: {}]   ;;  %s3962_s6 = inlined_call_operand.hbm [shape: f32[2,4], index: 6, kind: output, shape index: {}]  }
   0x1   :  { %12 = vsyncpa [#allocation6], 0 }
   0x2   :  { %13 = vsyncpa [#allocation4], 0  ;;  %s3311_s21 = smov [#allocation2]  }
   0x3   :  { %s21_s22 = sshll.u32 %s3311_s21, 4  ;;  %s22_s22 = int_to_ptr.vmem [resolvable:$true] %s21_s22 }
   0x4   :  { %s3253_s23 = scalar_lea.vmem %s22_s22, 16384  ;;  %p3258_p1 = scmp.lt.s32.totalorder %s22_s22, %s22_s22 }
   0x5   :  { %p3254_p0 = scmp.ne.s32.totalorder %s22_s22, %s3253_s23  ;;  %p3259_p2 = scmp.lt.s32.totalorder %s3253_s23, %s3253_s23 }
   0x7   :  { %p3260_p3 = por %p3259_p2, %p3258_p1 }
   0x9   :  { %p3261_p4 = pnand %p3260_p3, %p3254_p0 }
   0xb   :  { %3264 = shalt.err (!%p3261_p4)
}
   0xc   :  { %s3312_s24 = smov 256   ;;  %s3313_s25 = smov 16  }
   0xd   :  { %27 = dma.hbm_to_vmem [thread:$0]  %s3957_s1, 16384, %s22_s22, [#allocation3], %s3312_s24, %s3312_s24, %s3313_s25  }
   0xe   :  { %s3314_s28 = smov [#allocation5]  }
   0xf   :  { %s33_s29 = sshll.u32 %s3314_s28, 4  ;;  %s34_s29 = int_to_ptr.vmem [resolvable:$true] %s33_s29 }
  0x10   :  { %s3273_s30 = scalar_lea.vmem %s34_s29, 16384  ;;  %p3278_p6 = scmp.lt.s32.totalorder %s34_s29, %s34_s29 }
  0x11   :  { %p3274_p5 = scmp.ne.s32.totalorder %s34_s29, %s3273_s30  ;;  %p3279_p7 = scmp.lt.s32.totalorder %s3273_s30, %s3273_s30 }
  0x13   :  { %p3280_p8 = por %p3279_p7, %p3278_p6 }
  0x15   :  { %p3281_p9 = pnand %p3280_p8, %p3274_p5 }
  0x17   :  { %3284 = shalt.err (!%p3281_p9)
}
  0x18   :  { %39 = dma.hbm_to_vmem [thread:$0]  %s3958_s2, 16384, %s34_s29, [#allocation6], %s3312_s24, %s3312_s24, %s3313_s25  }
  0x19   :  { %3305 = dma.done.wait [#allocation3], 16384  }
  0x1a   :  { %3306 = vsyncadd [#allocation3], 4294950912 }
  0x1b   :  { %3307 = dma.done.wait [#allocation6], 16384  }
  0x1c   :  { %3308 = vsyncadd [#allocation6], 4294950912  ;;  %v2861_v0 = vld [vmem:[#allocation5 + $0xe4] ss:$16 sps:$4 sm:$0xff]   ;;  %v2865_v2 = vld [vmem:[#allocation5 + $0xe0] ss:$16 sps:$4 sm:$0xff]  }
  0x1d   :  { %v2863_v1 = vld [vmem:[#allocation5 + $0x2e4] ss:$16 sps:$4 sm:$0xff]   ;;  %1274 = vmatprep.subr.bf16.mxu0 %v2861_v0  ;;  %v2866_v3 = vld [vmem:[#allocation5 + $0x2e0] ss:$16 sps:$4 sm:$0xff]   ;;  %v3360_v46 = vld [vmem:[%s3956_s0 + $0x8] sm:$0xff]  ;;  %vm621_vm0 = vcmask 1041409  }
  0x1e   :  { %1315 = vmatprep.subr.bf16.mxu1 %v2863_v1  ;;  %v2867_v4 = vld [vmem:[#allocation5 + $0xc4] ss:$16 sps:$4 sm:$0xff]   ;;  %1275 = vmatpush1.bf16.msra.mxu0 %v2865_v2  ;;  %v2871_v6 = vld [vmem:[#allocation5 + $0xc0] ss:$16 sps:$4 sm:$0xff]   ;;  %v3365_v48 = vld [vmem:[%s3956_s0 + $0x28] sm:$0xff]  ;;  %s3315_s26 = smov [#allocation7]  }
  0x1f   :  { %1316 = vmatpush1.bf16.msra.mxu1 %v2866_v3  ;;  %v2869_v5 = vld [vmem:[#allocation5 + $0x2c4] ss:$16 sps:$4 sm:$0xff]   ;;  %1276 = vmatprep.subr.bf16.mxu0 %v2867_v4  ;;  %v2872_v7 = vld [vmem:[#allocation5 + $0x2c0] ss:$16 sps:$4 sm:$0xff]   ;;  %v3370_v49 = vld [vmem:[%s3956_s0 + $0x48] sm:$0xff]  ;;  %v241_v53 = vadd.f32 %v3365_v48, %v3360_v46  ;;  %s2519_s27 = sshll.u32 %s3315_s26, 4  ;;  %s2520_s27 = int_to_ptr.vmem [resolvable:$true] %s2519_s27 }
  0x20   :  { %1317 = vmatprep.subr.bf16.mxu1 %v2869_v5  ;;  %v2873_v8 = vld [vmem:[#allocation5 + $0xa4] ss:$16 sps:$4 sm:$0xff]   ;;  %v2877_v10 = vld [vmem:[#allocation5 + $0xa0] ss:$16 sps:$4 sm:$0xff]   ;;  %v3377_v54 = vld [vmem:[%s3956_s0 + $0x68] sm:$0xff]  ;;  %vm2511_vm1 = vcmask 25600   ;;  %p3290_p11 = scmp.lt.s32.totalorder %s2520_s27, %s2520_s27 }
  0x21   :  { %v2875_v9 = vld [vmem:[#allocation5 + $0x2a4] ss:$16 sps:$4 sm:$0xff]   ;;  %v2878_v11 = vld [vmem:[#allocation5 + $0x2a0] ss:$16 sps:$4 sm:$0xff]   ;;  %v3382_v55 = vld [vmem:[%s3956_s0 + $0x108] sm:$0xff]  ;;  %v242_v60 = vadd.f32 %v241_v53, %v3370_v49  ;;  %s3285_s28 = scalar_lea.vmem %s2520_s27, 32 }
  0x22   :  { %1277 = vmatpush1.bf16.msra.mxu0 %v2871_v6  ;;  %v2879_v12 = vld [vmem:[#allocation5 + $0x84] ss:$16 sps:$4 sm:$0xff]   ;;  %v2883_v14 = vld [vmem:[#allocation5 + $0x80] ss:$16 sps:$4 sm:$0xff]   ;;  %v3387_v56 = vld [vmem:[%s3956_s0 + $0x128] sm:$0xff]  ;;  %p3286_p10 = scmp.ne.s32.totalorder %s2520_s27, %s3285_s28  ;;  %p3291_p12 = scmp.lt.s32.totalorder %s3285_s28, %s3285_s28 }
  0x23   :  { %1318 = vmatpush1.bf16.msra.mxu1 %v2872_v7  ;;  %1278 = vmatprep.subr.bf16.mxu0 %v2873_v8  ;;  %v2881_v13 = vld [vmem:[#allocation5 + $0x284] ss:$16 sps:$4 sm:$0xff]   ;;  %v2884_v15 = vld [vmem:[#allocation5 + $0x280] ss:$16 sps:$4 sm:$0xff]   ;;  %v3392_v59 = vld [vmem:[%s3956_s0 + $0x148] sm:$0xff]  ;;  %v293_v61 = vadd.f32 %v3387_v56, %v3382_v55  ;;  %v243_v1 = vadd.f32 %v242_v60, %v3377_v54 }
  0x24   :  { %1319 = vmatprep.subr.bf16.mxu1 %v2875_v9  ;;  %v2885_v16 = vld [vmem:[#allocation5 + $0x64] ss:$16 sps:$4 sm:$0xff]   ;;  %v2889_v18 = vld [vmem:[#allocation5 + $0x60] ss:$16 sps:$4 sm:$0xff]   ;;  %v3400_v63 = vld [vmem:[%s3956_s0 + $0x88] sm:$0xff]  ;;  %p3292_p13 = por %p3291_p12, %p3290_p11 }
  0x25   :  { %v2887_v17 = vld [vmem:[#allocation5 + $0x264] ss:$16 sps:$4 sm:$0xff]   ;;  %v2890_v19 = vld [vmem:[#allocation5 + $0x260] ss:$16 sps:$4 sm:$0xff]   ;;  %v3405_v0 = vld [vmem:[%s3956_s0 + $0x168] sm:$0xff]  ;;  %v294_v2 = vadd.f32 %v293_v61, %v3392_v59 }
  0x26   :  { %1279 = vmatpush1.bf16.msra.mxu0 %v2877_v10  ;;  %v2891_v20 = vld [vmem:[#allocation5 + $0x44] ss:$16 sps:$4 sm:$0xff]   ;;  %v2895_v22 = vld [vmem:[#allocation5 + $0x40] ss:$16 sps:$4 sm:$0xff]   ;;  %v3412_v3 = vld [vmem:[%s3956_s0 + $0x18] sm:$0xff]  ;;  %p3293_p0 = pnand %p3292_p13, %p3286_p10 }
  0x27   :  { %1320 = vmatpush1.bf16.msra.mxu1 %v2878_v11  ;;  %1280 = vmatprep.subr.bf16.mxu0 %v2879_v12  ;;  %v2893_v21 = vld [vmem:[#allocation5 + $0x244] ss:$16 sps:$4 sm:$0xff]   ;;  %v2896_v23 = vld [vmem:[#allocation5 + $0x240] ss:$16 sps:$4 sm:$0xff]   ;;  %v3417_v4 = vld [vmem:[%s3956_s0 + $0x38] sm:$0xff] }
  0x28   :  { %1321 = vmatprep.subr.bf16.mxu1 %v2881_v13  ;;  %v2897_v24 = vld [vmem:[#allocation5 + $0x24] ss:$16 sps:$4 sm:$0xff]   ;;  %v2901_v26 = vld [vmem:[#allocation5 + $0x20] ss:$16 sps:$4 sm:$0xff]   ;;  %v3422_v5 = vld [vmem:[%s3956_s0 + $0x58] sm:$0xff]  ;;  %v267_v9 = vadd.f32 %v3417_v4, %v3412_v3  ;;  %v244_v13 = vadd.f32 %v243_v1, %v3400_v63 }
  0x29   :  { %v2899_v25 = vld [vmem:[#allocation5 + $0x224] ss:$16 sps:$4 sm:$0xff]   ;;  %v2902_v27 = vld [vmem:[#allocation5 + $0x220] ss:$16 sps:$4 sm:$0xff]   ;;  %v3427_v7 = vld [vmem:[%s3956_s0 + $0xa8] sm:$0xff] }
  0x2a   :  { %1281 = vmatpush1.bf16.msra.mxu0 %v2883_v14  ;;  %v2903_v28 = vld [vmem:[#allocation5 + $0x4] ss:$16 sps:$4 sm:$0xff]   ;;  %v2907_v30 = vld [vmem:[#allocation5] ss:$16 sps:$4 sm:$0xff]   ;;  %v3432_v8 = vld [vmem:[%s3956_s0 + $0x188] sm:$0xff]  ;;  %v295_v14 = vadd.f32 %v294_v2, %v3405_v0 }
  0x2b   :  { %1322 = vmatpush1.bf16.msra.mxu1 %v2884_v15  ;;  %1282 = vmatprep.subr.bf16.mxu0 %v2885_v16  ;;  %v2905_v29 = vld [vmem:[#allocation5 + $0x204] ss:$16 sps:$4 sm:$0xff]   ;;  %v2908_v31 = vld [vmem:[#allocation5 + $0x200] ss:$16 sps:$4 sm:$0xff]   ;;  %v3439_v12 = vld [vmem:[%s3956_s0 + $0xc8] sm:$0xff] }
  0x2c   :  { %1323 = vmatprep.subr.bf16.mxu1 %v2887_v17  ;;  %v2909_v32 = vld [vmem:[#allocation5 + $0x1e4] ss:$16 sps:$4 sm:$0xff]   ;;  %v2913_v34 = vld [vmem:[#allocation5 + $0x1e0] ss:$16 sps:$4 sm:$0xff]   ;;  %v3446_v15 = vld [vmem:[%s3956_s0 + $0x78] sm:$0xff] }
  0x2d   :  { %v2911_v33 = vld [vmem:[#allocation5 + $0x3e4] ss:$16 sps:$4 sm:$0xff]   ;;  %v2914_v35 = vld [vmem:[#allocation5 + $0x3e0] ss:$16 sps:$4 sm:$0xff]   ;;  %v3451_v16 = vld [vmem:[%s3956_s0 + $0x118] sm:$0xff] }
  0x2e   :  { %1283 = vmatpush1.bf16.msra.mxu0 %v2889_v18  ;;  %v2915_v36 = vld [vmem:[#allocation5 + $0x1c4] ss:$16 sps:$4 sm:$0xff]   ;;  %v2919_v38 = vld [vmem:[#allocation5 + $0x1c0] ss:$16 sps:$4 sm:$0xff]   ;;  %v3539_v60 = vld [vmem:[%s3956_s0 + $0x1b8] sm:$0xff] }
  0x2f   :  { %1324 = vmatpush1.bf16.msra.mxu1 %v2890_v19  ;;  %1284 = vmatprep.subr.bf16.mxu0 %v2891_v20  ;;  %v2917_v37 = vld [vmem:[#allocation5 + $0x3c4] ss:$16 sps:$4 sm:$0xff]   ;;  %v2920_v39 = vld [vmem:[#allocation5 + $0x3c0] ss:$16 sps:$4 sm:$0xff]   ;;  %v3456_v19 = vld [vmem:[%s3956_s0 + $0x1a8] sm:$0xff] }
  0x30   :  { %1325 = vmatprep.subr.bf16.mxu1 %v2893_v21  ;;  %v2921_v40 = vld [vmem:[#allocation5 + $0x1a4] ss:$16 sps:$4 sm:$0xff]   ;;  %v2925_v42 = vld [vmem:[#allocation5 + $0x1a0] ss:$16 sps:$4 sm:$0xff]   ;;  %v3461_v20 = vld [vmem:[%s3956_s0 + $0x138] sm:$0xff] }
  0x31   :  { %v2923_v41 = vld [vmem:[#allocation5 + $0x3a4] ss:$16 sps:$4 sm:$0xff]   ;;  %v2926_v43 = vld [vmem:[#allocation5 + $0x3a0] ss:$16 sps:$4 sm:$0xff]   ;;  %v3466_v21 = vld [vmem:[%s3956_s0 + $0x158] sm:$0xff] }
  0x32   :  { %1285 = vmatpush1.bf16.msra.mxu0 %v2895_v22  ;;  %v2927_v44 = vld [vmem:[#allocation5 + $0x184] ss:$16 sps:$4 sm:$0xff]   ;;  %v2931_v47 = vld [vmem:[#allocation5 + $0x180] ss:$16 sps:$4 sm:$0xff]   ;;  %v268_v22 = vadd.f32 %v267_v9, %v3422_v5 }
  0x33   :  { %1326 = vmatpush1.bf16.msra.mxu1 %v2896_v23  ;;  %1286 = vmatprep.subr.bf16.mxu0 %v2897_v24  ;;  %v2929_v45 = vld [vmem:[#allocation5 + $0x384] ss:$16 sps:$4 sm:$0xff]   ;;  %v2932_v50 = vld [vmem:[#allocation5 + $0x380] ss:$16 sps:$4 sm:$0xff]   ;;  %v3472_v23 = vld [vmem:[%s3956_s0 + $0xe8] sm:$0xff] }
  0x34   :  { %1327 = vmatprep.subr.bf16.mxu1 %v2899_v25  ;;  %v2933_v51 = vld [vmem:[#allocation5 + $0x164] ss:$16 sps:$4 sm:$0xff]   ;;  %v2937_v57 = vld [vmem:[#allocation5 + $0x160] ss:$16 sps:$4 sm:$0xff]   ;;  %v3477_v24 = vld [vmem:[%s3956_s0 + $0x1c8] sm:$0xff]  ;;  %v245_v25 = vadd.f32 %v244_v13, %v3427_v7 }
  0x35   :  { %v2935_v52 = vld [vmem:[#allocation5 + $0x364] ss:$16 sps:$4 sm:$0xff]   ;;  %v2938_v58 = vld [vmem:[#allocation5 + $0x360] ss:$16 sps:$4 sm:$0xff]  }
  0x36   :  { %1287 = vmatpush1.bf16.msra.mxu0 %v2901_v26  ;;  %v2939_v62 = vld [vmem:[#allocation5 + $0x144] ss:$16 sps:$4 sm:$0xff]   ;;  %v2943_v10 = vld [vmem:[#allocation5 + $0x140] ss:$16 sps:$4 sm:$0xff]   ;;  %v296_v26 = vadd.f32 %v295_v14, %v3432_v8 }
  0x37   :  { %1328 = vmatpush1.bf16.msra.mxu1 %v2902_v27  ;;  %1288 = vmatprep.subr.bf16.mxu0 %v2903_v28  ;;  %v2941_v6 = vld [vmem:[#allocation5 + $0x344] ss:$16 sps:$4 sm:$0xff]   ;;  %v2944_v11 = vld [vmem:[#allocation5 + $0x340] ss:$16 sps:$4 sm:$0xff]   ;;  %v3484_v27 = vld [vmem:[%s3956_s0 + $0x98] sm:$0xff]  ;;  %v319_v28 = vadd.f32 %v3461_v20, %v3451_v16 }
  0x38   :  { %1329 = vmatprep.subr.bf16.mxu1 %v2905_v29  ;;  %v2945_v17 = vld [vmem:[#allocation5 + $0x124] ss:$16 sps:$4 sm:$0xff]   ;;  %v3491_v29 = vld [vmem:[%s3956_s0 + $0x178] sm:$0xff] }
  0x39   :  { %v2947_v18 = vld [vmem:[#allocation5 + $0x324] ss:$16 sps:$4 sm:$0xff]  }
  0x3a   :  { %1289 = vmatpush1.bf16.msra.mxu0 %v2907_v30  ;;  %v269_v30 = vadd.f32 %v268_v22, %v3446_v15  ;;  %v84_v53 = vld [vmem:[%s3956_s0 + $0x100] sm:$0xff] }
  0x3b   :  { %1330 = vmatpush1.bf16.msra.mxu1 %v2908_v31  ;;  %1290 = vmatprep.subr.bf16.mxu0 %v2909_v32  ;;  %v52_v31 = vld [vmem:[%s3956_s0] sm:$0xff] }
  0x3c   :  { %1331 = vmatprep.subr.bf16.mxu1 %v2911_v33  ;;  %v56_v32 = vld [vmem:[%s3956_s0 + $0x20] sm:$0xff] }
  0x3d   :  { %v2949_v33 = vld [vmem:[#allocation5 + $0x120] ss:$16 sps:$4 sm:$0xff]  }
  0x3e   :  { %1291 = vmatpush2.bf16.msra.mxu0 %v2913_v34  ;;  %v2950_v34 = vld [vmem:[#allocation5 + $0x320] ss:$16 sps:$4 sm:$0xff]  }
  0x3f   :  { %1332 = vmatpush2.bf16.msra.mxu1 %v2914_v35  ;;  %1292 = vmatprep.subr.bf16.mxu0 %v2915_v36  ;;  %v246_v35 = vadd.f32 %v245_v25, %v3439_v12  ;;  %v297_v36 = vadd.f32 %v296_v26, %v3456_v19  ;;  %v92_v13 = vld [vmem:[%s3956_s0 + $0x140] sm:$0xff] }
  0x40   :  { %1333 = vmatprep.subr.bf16.mxu1 %v2917_v37  ;;  %v3505_v37 = vld [vmem:[%s3956_s0 + $0xb8] sm:$0xff]  ;;  %v68_v22 = vld [vmem:[%s3956_s0 + $0x80] sm:$0xff] }
  0x42   :  { %1293 = vmatpush2.bf16.msra.mxu0 %v2919_v38  ;;  %v320_v38 = vadd.f32 %v319_v28, %v3466_v21 }
  0x43   :  { %1334 = vmatpush2.bf16.msra.mxu1 %v2920_v39  ;;  %1294 = vmatprep.subr.bf16.mxu0 %v2921_v40  ;;  %v116_v39 = vmax.f32 %v52_v31, %v56_v32  ;;  %v2951_v40 = vld [vmem:[#allocation5 + $0x104] ss:$16 sps:$4 sm:$0xff]  }
  0x44   :  { %1335 = vmatprep.subr.bf16.mxu1 %v2923_v41  ;;  %v3511_v41 = vld [vmem:[%s3956_s0 + $0x1e8] sm:$0xff] }
  0x46   :  { %1295 = vmatpush2.bf16.msra.mxu0 %v2925_v42  ;;  %v3516_v42 = vld [vmem:[%s3956_s0 + $0x198] sm:$0xff] }
  0x47   :  { %1336 = vmatpush2.bf16.msra.mxu1 %v2926_v43  ;;  %1296 = vmatprep.subr.bf16.mxu0 %v2927_v44  ;;  %v270_v43 = vadd.f32 %v269_v30, %v3484_v27  ;;  %v60_v44 = vld [vmem:[%s3956_s0 + $0x40] sm:$0xff] }
  0x48   :  { %1337 = vmatprep.subr.bf16.mxu1 %v2929_v45  ;;  %v228_v45 = vadd.f32 %v56_v32, %v52_v31  ;;  %v117_v1 = vmax.f32 %v116_v39, %v60_v44  ;;  %v2955_v30 = vld [vmem:[#allocation5 + $0x100] ss:$16 sps:$4 sm:$0xff]  }
  0x49   :  { %v271_v61 = vadd.f32 %v270_v43, %v3505_v37  ;;  %v2956_v31 = vld [vmem:[#allocation5 + $0x300] ss:$16 sps:$4 sm:$0xff]   ;;  %v3571_v43 = vld [vmem:[%s3956_s0 + $0x1f8] sm:$0xff] }
  0x4a   :  { %1297 = vmatpush2.bf16.msra.mxu0 %v2931_v47  ;;  %v247_v47 = vadd.f32 %v246_v35, %v3472_v23  ;;  %v229_v14 = vadd.f32 %v228_v45, %v60_v44  ;;  %3966 = vst [vmem:[#allocation11_spill] sm:$0xff] %v3571_v43 }
  0x4b   :  { %1338 = vmatpush2.bf16.msra.mxu1 %v2932_v50  ;;  %1298 = vmatprep.subr.bf16.mxu0 %v2933_v51  ;;  %v298_v50 = vadd.f32 %v297_v36, %v3477_v24  ;;  %v3527_v51 = vld [vmem:[%s3956_s0 + $0xd8] sm:$0xff] }
  0x4c   :  { %1339 = vmatprep.subr.bf16.mxu1 %v2935_v52  ;;  %v321_v52 = vadd.f32 %v320_v38, %v3491_v29  ;;  %v96_v38 = vld [vmem:[%s3956_s0 + $0x160] sm:$0xff] }
  0x4d   :  { %v299_v9 = vadd.f32 %v298_v50, %v3511_v41 }
  0x4e   :  { %1299 = vmatpush2.bf16.msra.mxu0 %v2937_v57  ;;  %v88_v57 = vld [vmem:[%s3956_s0 + $0x120] sm:$0xff] }
  0x4f   :  { %1340 = vmatpush2.bf16.msra.mxu1 %v2938_v58  ;;  %1300 = vmatprep.subr.bf16.mxu0 %v2939_v62  ;;  %v2953_v58 = vld [vmem:[#allocation5 + $0x304] ss:$16 sps:$4 sm:$0xff]   ;;  %v168_v2 = vmax.f32 %v84_v53, %v88_v57  ;;  %v280_v28 = vadd.f32 %v88_v57, %v84_v53  ;;  %v300_v35 = vrot.slane %v299_v9, 4 }
  0x50   :  { %1341 = vmatprep.subr.bf16.mxu1 %v2941_v6  ;;  %v64_v62 = vld [vmem:[%s3956_s0 + $0x60] sm:$0xff]  ;;  %v248_v6 = vrot.slane %v247_v47, 4 }
  0x51   :  { %v118_v25 = vmax.f32 %v117_v1, %v64_v62  ;;  %v169_v26 = vmax.f32 %v168_v2, %v92_v13  ;;  %v230_v39 = vadd.f32 %v229_v14, %v64_v62  ;;  %v301_v50 = vadd.f32 %v300_v35, %v299_v9  ;;  %v104_v14 = vld [vmem:[%s3956_s0 + $0x1a0] sm:$0xff] }
  0x52   :  { %1301 = vmatpush2.bf16.msra.mxu0 %v2943_v10  ;;  %v3549_v10 = vld [vmem:[%s3956_s0 + $0xf8] sm:$0xff]  ;;  %v249_v32 = vadd.f32 %v248_v6, %v247_v47  ;;  %v281_v2 = vadd.f32 %v280_v28, %v92_v13  ;;  %v108_v13 = vld [vmem:[%s3956_s0 + $0x1c0] sm:$0xff] }
  0x53   :  { %1342 = vmatpush2.bf16.msra.mxu1 %v2944_v11  ;;  %1302 = vmatprep.subr.bf16.mxu0 %v2945_v17  ;;  %v322_v11 = vadd.f32 %v321_v52, %v3516_v42  ;;  %v3558_v17 = vld [vmem:[%s3956_s0 + $0x1d8] sm:$0xff]  ;;  %v119_v44 = vmax.f32 %v118_v25, %v68_v22  ;;  %v170_v45 = vmax.f32 %v169_v26, %v96_v38  ;;  %v302_v9 = vrot.slane %v301_v50, 2  ;;  %v112_v28 = vld [vmem:[%s3956_s0 + $0x1e0] sm:$0xff] }
  0x54   :  { %1343 = vmatprep.subr.bf16.mxu1 %v2947_v18  ;;  %v272_v18 = vadd.f32 %v271_v61, %v3527_v51  ;;  %v250_v47 = vrot.slane %v249_v32, 2  ;;  %v231_v53 = vadd.f32 %v230_v39, %v68_v22  ;;  %v80_v61 = vld [vmem:[%s3956_s0 + $0xe0] sm:$0xff]  ;;  %v282_v35 = vadd.f32 %v281_v2, %v96_v38 }
  0x55   :  { %v323_v36 = vadd.f32 %v322_v11, %v3539_v60 }
  0x56   :  { %1303 = vmatpush2.bf16.msra.mxu0 %v2949_v33  ;;  %v273_v33 = vadd.f32 %v272_v18, %v3549_v10  ;;  %v251_v6 = vadd.f32 %v250_v47, %v249_v32  ;;  %v54_v47 = vld [vmem:[%s3956_s0 + $0x10] sm:$0xff] }
  0x57   :  { %1344 = vmatpush2.bf16.msra.mxu1 %v2950_v34  ;;  %1304 = vmatprep.subr.bf16.mxu0 %v2951_v40  ;;  %v72_v34 = vld [vmem:[%s3956_s0 + $0xa0] sm:$0xff]  ;;  %v324_v52 = vadd.f32 %v323_v36, %v3558_v17  ;;  %v2959_v36 = vld [vmem:[#allocation5 + $0xec] ss:$16 sps:$4 sm:$0xff]  }
  0x58   :  { %1345 = vmatprep.subr.bf16.mxu1 %v2953_v58  ;;  %v100_v40 = vld [vmem:[%s3956_s0 + $0x180] sm:$0xff]  ;;  %v274_v57 = vrot.slane %v273_v33, 4  ;;  %v120_v62 = vmax.f32 %v119_v44, %v72_v34  ;;  %v232_v18 = vadd.f32 %v231_v53, %v72_v34  ;;  %v252_v39 = vrot.slane %v251_v6, 1 }
  0x59   :  { %v76_v58 = vld [vmem:[%s3956_s0 + $0xc0] sm:$0xff]  ;;  %v171_v1 = vmax.f32 %v170_v45, %v100_v40  ;;  %v325_v11 = vadd.f32 %v324_v52, %v3571_v43  ;;  %v303_v44 = vadd.f32 %v302_v9, %v301_v50  ;;  %v283_v38 = vadd.f32 %v282_v35, %v100_v40  ;;  %v62_v40 = vld [vmem:[%s3956_s0 + $0x50] sm:$0xff] }
  0x5a   :  { %1305 = vmatpush2.bf16.msra.mxu0 %v2955_v30  ;;  %v275_v22 = vadd.f32 %v274_v57, %v273_v33  ;;  %v121_v25 = vmax.f32 %v120_v62, %v76_v58  ;;  %v233_v30 = vadd.f32 %v232_v18, %v76_v58  ;;  %v253_v50 = vadd.f32 %v252_v39, %v251_v6  ;;  %v58_v58 = vld [vmem:[%s3956_s0 + $0x30] sm:$0xff] }
  0x5b   :  { %1346 = vmatpush2.bf16.msra.mxu1 %v2956_v31  ;;  %v172_v26 = vmax.f32 %v171_v1, %v104_v14  ;;  %v326_v45 = vrot.slane %v325_v11, 4  ;;  %v2962_v31 = vld [vmem:[#allocation5 + $0x2ec] ss:$16 sps:$4 sm:$0xff]   ;;  %1356 = vmatprep.subr.bf16.mxu0 %v2959_v36  ;;  %v304_v52 = vrot.slane %v303_v44, 1  ;;  %v284_v2 = vadd.f32 %v283_v38, %v104_v14 }
  0x5c   :  { %v276_v32 = vrot.slane %v275_v22, 2  ;;  %v3597_v33 = vmax.f32 %v121_v25, %v80_v61  ;;  %v234_v57 = vadd.f32 %v233_v30, %v80_v61  ;;  %1397 = vmatprep.subr.bf16.mxu1 %v2962_v31  ;;  %v142_v9 = vmax.f32 %v54_v47, %v58_v58  ;;  %v86_v61 = vld [vmem:[%s3956_s0 + $0x110] sm:$0xff] }
  0x5d   :  { %v173_v34 = vmax.f32 %v172_v26, %v108_v13  ;;  %v327_v53 = vadd.f32 %v326_v45, %v325_v11  ;;  %v305_v18 = vadd.f32 %v304_v52, %v303_v44  ;;  %v334_v25 = vmul.f32 0.015625, %v253_v50  ;;  %v90_v11 = vld [vmem:[%s3956_s0 + $0x130] sm:$0xff] }
  0x5e   :  { %3967 = vst [vmem:[#allocation12_spill] sm:$0xff] %v3597_v33  ;;  %v277_v62 = vadd.f32 %v276_v32, %v275_v22  ;;  %v235_v26 = vrot.slane %v234_v57, 4  ;;  %v285_v35 = vadd.f32 %v284_v2, %v108_v13  ;;  %v143_v14 = vmax.f32 %v142_v9, %v62_v40  ;;  %v66_v44 = vld [vmem:[%s3956_s0 + $0x70] sm:$0xff] }
  0x5f   :  { %v3605_v1 = vmax.f32 %v173_v34, %v112_v28  ;;  %v328_v6 = vrot.slane %v327_v53, 2  ;;  %v194_v36 = vmax.f32 %v86_v61, %v90_v11  ;;  %v338_v39 = vmul.f32 0.015625, %v305_v18  ;;  %v94_v32 = vld [vmem:[%s3956_s0 + $0x150] sm:$0xff] }
  0x60   :  { %v278_v22 = vrot.slane %v277_v62, 1  ;;  %v342_v45 = vpack.c.bf16 %v334_v25, %v334_v25  ;;  %v236_v31 = vadd.f32 %v235_v26, %v234_v57  ;;  %v286_v38 = vadd.f32 %v285_v35, %v112_v28  ;;  %v70_v13 = vld [vmem:[%s3956_s0 + $0x90] sm:$0xff] }
  0x61   :  { %3968 = vst [vmem:[#allocation13_spill] sm:$0xff] %v3605_v1  ;;  %v329_v30 = vadd.f32 %v328_v6, %v327_v53  ;;  %v144_v50 = vmax.f32 %v143_v14, %v66_v44  ;;  %v195_v52 = vmax.f32 %v194_v36, %v94_v32  ;;  %v346_v2 = vpack.c.bf16 %v338_v39, %v338_v39  ;;  %v98_v18 = vld [vmem:[%s3956_s0 + $0x170] sm:$0xff] }
  0x62   :  { %v279_v34 = vadd.f32 %v278_v22, %v277_v62  ;;  %v614_v9 = vunpack.c.l.b16 %v342_v45  ;;  %v237_v57 = vrot.slane %v236_v31, 2  ;;  %v287_v6 = vrot.slane %v286_v38, 4  ;;  %v74_v35 = vld [vmem:[%s3956_s0 + $0xb0] sm:$0xff] }
  0x63   :  { %v330_v53 = vrot.slane %v329_v30, 1  ;;  %v145_v26 = vmax.f32 %v144_v50, %v70_v13  ;;  %v196_v1 = vmax.f32 %v195_v52, %v98_v18  ;;  %v618_v62 = vunpack.c.l.b16 %v346_v2  ;;  %v102_v14 = vld [vmem:[%s3956_s0 + $0x190] sm:$0xff] }
  0x64   :  { %v336_v25 = vmul.f32 0.015625, %v279_v34  ;;  %v238_v22 = vadd.f32 %v237_v57, %v236_v31  ;;  %v254_v36 = vadd.f32 %v58_v58, %v54_v47  ;;  %v288_v45 = vadd.f32 %v287_v6, %v286_v38  ;;  %v106_v47 = vld [vmem:[%s3956_s0 + $0x1b0] sm:$0xff] }
  0x65   :  { %v331_v28 = vadd.f32 %v330_v53, %v329_v30  ;;  %v146_v33 = vmax.f32 %v145_v26, %v74_v35  ;;  %v197_v43 = vmax.f32 %v196_v1, %v102_v14  ;;  %v623_v34 = vsel %vm621_vm0, %v618_v62, %v614_v9  ;;  %v78_v30 = vld [vmem:[%s3956_s0 + $0xd0] sm:$0xff] }
  0x66   :  { %v344_v39 = vpack.c.bf16 %v336_v25, %v336_v25  ;;  %v239_v52 = vrot.slane %v238_v22, 1  ;;  %v255_v31 = vadd.f32 %v254_v36, %v62_v40  ;;  %v3638_v2 = vpack.c.b16 %v623_v34, %v623_v34  ;;  %v82_v9 = vld [vmem:[%s3956_s0 + $0xf0] sm:$0xff] }
  0x67   :  { %v340_v50 = vmul.f32 0.015625, %v331_v28  ;;  %v289_v57 = vrot.slane %v288_v45, 2  ;;  %v147_v58 = vmax.f32 %v146_v33, %v78_v30  ;;  %v198_v25 = vmax.f32 %v197_v43, %v106_v47  ;;  %v110_v26 = vld [vmem:[%s3956_s0 + $0x1d0] sm:$0xff] }
  0x68   :  { %v616_v53 = vunpack.c.l.b16 %v344_v39  ;;  %v240_v1 = vadd.f32 %v239_v52, %v238_v22  ;;  %v256_v6 = vadd.f32 %v255_v31, %v66_v44  ;;  %1306 = vmatprep.mubr.bf16.mxu0 %v3638_v2  ;;  %v306_v28 = vadd.f32 %v90_v11, %v86_v61  ;;  %v114_v43 = vld [vmem:[%s3956_s0 + $0x1f0] sm:$0xff] }
  0x69   :  { %v348_v38 = vpack.c.bf16 %v340_v50, %v340_v50  ;;  %v290_v40 = vadd.f32 %v289_v57, %v288_v45  ;;  %v3650_v62 = vmax.f32 %v147_v58, %v82_v9  ;;  %v199_v39 = vmax.f32 %v198_v25, %v110_v26 }
  0x6a   :  { %v333_v33 = vmul.f32 0.015625, %v240_v1  ;;  %v257_v22 = vadd.f32 %v256_v6, %v70_v13  ;;  %v307_v44 = vadd.f32 %v306_v28, %v94_v32  ;;  %v129_v45 = vmax.f32 %v3360_v46, %v3365_v48 }
  0x6b   :  { %v620_v36 = vunpack.c.l.b16 %v348_v38  ;;  %v291_v34 = vrot.slane %v290_v40, 1  ;;  %v181_v50 = vmax.f32 %v3382_v55, %v3387_v56  ;;  %v3660_v61 = vmax.f32 %v199_v39, %v114_v43 }
  0x6c   :  { %v341_v31 = vpack.c.bf16 %v333_v33, %v333_v33  ;;  %v258_v11 = vadd.f32 %v257_v22, %v74_v35  ;;  %v308_v58 = vadd.f32 %v307_v44, %v98_v18  ;;  %v130_v38 = vmax.f32 %v129_v45, %v3370_v49  ;;  %v2965_v33 = vld [vmem:[#allocation5 + $0xcc] ss:$16 sps:$4 sm:$0xff]  }
  0x6d   :  { %v625_v52 = vsel %vm621_vm0, %v620_v36, %v616_v53  ;;  %v292_v13 = vadd.f32 %v291_v34, %v290_v40  ;;  %v182_v32 = vmax.f32 %v181_v50, %v3392_v59  ;;  %v155_v46 = vmax.f32 %v3412_v3, %v3417_v4 }
  0x6e   :  { %v3662_v57 = vpack.c.b16 %v625_v52, %v625_v52  ;;  %v259_v1 = vadd.f32 %v258_v11, %v78_v30  ;;  %v309_v55 = vadd.f32 %v308_v58, %v102_v14  ;;  %v131_v56 = vmax.f32 %v130_v38, %v3377_v54  ;;  %v3970_v11 = vld [vmem:[#allocation12_spill] sm:$0xff] }
  0x6f   :  { %v337_v48 = vmul.f32 0.015625, %v292_v13  ;;  %v207_v35 = vmax.f32 %v3451_v16, %v3461_v20  ;;  %v613_v53 = vunpack.c.l.b16 %v341_v31  ;;  %v183_v18 = vmax.f32 %v182_v32, %v3405_v0  ;;  %v3969_v31 = vld [vmem:[#allocation11_spill] sm:$0xff] }
  0x70   :  { %1347 = vmatprep.mubr.bf16.mxu1 %v3662_v57  ;;  %v260_v25 = vadd.f32 %v259_v1, %v82_v9  ;;  %v156_v49 = vmax.f32 %v155_v46, %v3422_v5  ;;  %v310_v59 = vadd.f32 %v309_v55, %v106_v47  ;;  %v132_v6 = vmax.f32 %v131_v56, %v3400_v63  ;;  %v2977_v46 = vld [vmem:[#allocation5 + $0x8c] ss:$16 sps:$4 sm:$0xff]  }
  0x71   :  { %v345_v30 = vpack.c.bf16 %v337_v48, %v337_v48  ;;  %v208_v3 = vmax.f32 %v207_v35, %v3466_v21  ;;  %v184_v14 = vmax.f32 %v183_v18, %v3432_v8  ;;  %v2957_v21 = vld [vmem:[#allocation5 + $0xe8] ss:$16 sps:$4 sm:$0xff]  }
  0x72   :  { %v261_v4 = vrot.slane %v260_v25, 4  ;;  %v157_v54 = vmax.f32 %v156_v49, %v3446_v15  ;;  %v311_v28 = vadd.f32 %v310_v59, %v110_v26  ;;  %v133_v16 = vmax.f32 %v132_v6, %v3427_v7  ;;  %v2975_v59 = vld [vmem:[#allocation5 + $0x88] ss:$16 sps:$4 sm:$0xff]  }
  0x73   :  { %v617_v40 = vunpack.c.l.b16 %v345_v30  ;;  %v209_v20 = vmax.f32 %v208_v3, %v3491_v29  ;;  %v185_v5 = vmax.f32 %v184_v14, %v3456_v19 }
  0x74   :  { %v262_v0 = vadd.f32 %v261_v4, %v260_v25  ;;  %v158_v47 = vmax.f32 %v157_v54, %v3484_v27  ;;  %v312_v9 = vadd.f32 %v311_v28, %v114_v43  ;;  %v134_v36 = vmax.f32 %v133_v16, %v3439_v12  ;;  %v2963_v43 = vld [vmem:[#allocation5 + $0xc8] ss:$16 sps:$4 sm:$0xff]   ;;  %v2983_v4 = vld [vmem:[#allocation5 + $0x6c] ss:$16 sps:$4 sm:$0xff]  }
  0x75   :  { %v622_v63 = vsel %vm621_vm0, %v617_v40, %v613_v53  ;;  %v210_v8 = vmax.f32 %v209_v20, %v3516_v42  ;;  %v186_v7 = vmax.f32 %v185_v5, %v3477_v24 }
  0x76   :  { %v3685_v15 = vpack.c.b16 %v622_v63, %v622_v63  ;;  %v263_v26 = vrot.slane %v262_v0, 2  ;;  %v159_v29 = vmax.f32 %v158_v47, %v3505_v37  ;;  %v313_v39 = vrot.slane %v312_v9, 4 }
  0x77   :  { %v135_v19 = vmax.f32 %v134_v36, %v3472_v23  ;;  %v211_v27 = vmax.f32 %v210_v8, %v3539_v60  ;;  %v187_v12 = vmax.f32 %v186_v7, %v3511_v41  ;;  %v2971_v23 = vld [vmem:[#allocation5 + $0xac] ss:$16 sps:$4 sm:$0xff]  }
  0x78   :  { %1307 = vmatmul.mubr.bf16.vlgmr.msra.gmra.mxu0 %v3685_v15  ;;  %v264_v22 = vadd.f32 %v263_v26, %v262_v0  ;;  %v160_v42 = vmax.f32 %v159_v29, %v3527_v51  ;;  %v314_v34 = vadd.f32 %v313_v39, %v312_v9  ;;  %v123_v51 = vrot.slane %v3970_v11, 4  ;;  %v3971_v26 = vld [vmem:[#allocation13_spill] sm:$0xff]  ;;  %v2989_v7 = vld [vmem:[#allocation5 + $0x4c] ss:$16 sps:$4 sm:$0xff]  }
  0x79   :  { %1357 = vmatpush1.bf16.msra.mxu0 %v2957_v21  ;;  %1388 = vmatprep.mubr.bf16.mxu0 %v3638_v2  ;;  %v136_v24 = vrot.slane %v135_v19, 4  ;;  %v212_v37 = vmax.f32 %v211_v27, %v3558_v17  ;;  %v188_v45 = vrot.slane %v187_v12, 4  ;;  %v2969_v2 = vld [vmem:[#allocation5 + $0xa8] ss:$16 sps:$4 sm:$0xff]   ;;  %v149_v27 = vrot.slane %v3650_v62, 4 }
  0x7a   :  { %v265_v44 = vrot.slane %v264_v22, 1  ;;  %1358 = vmatprep.subr.bf16.mxu0 %v2965_v33  ;;  %v161_v60 = vmax.f32 %v160_v42, %v3549_v10  ;;  %v315_v50 = vrot.slane %v314_v34, 2  ;;  %v124_v10 = vmax.f32 %v3970_v11, %v123_v51  ;;  %v2981_v21 = vld [vmem:[#allocation5 + $0x68] ss:$16 sps:$4 sm:$0xff]   ;;  %v2995_v11 = vld [vmem:[#allocation5 + $0x2c] ss:$16 sps:$4 sm:$0xff]  }
  0x7b   :  { %v137_v52 = vmax.f32 %v135_v19, %v136_v24  ;;  %v213_v41 = vmax.f32 %v212_v37, %v3969_v31  ;;  %v189_v58 = vmax.f32 %v187_v12, %v188_v45  ;;  %v175_v33 = vrot.slane %v3971_v26, 4  ;;  %v2968_v45 = vld [vmem:[#allocation5 + $0x2cc] ss:$16 sps:$4 sm:$0xff]  }
  0x7c   :  { %v266_v13 = vadd.f32 %v265_v44, %v264_v22  ;;  %v162_v38 = vrot.slane %v161_v60, 4  ;;  %v316_v1 = vadd.f32 %v315_v50, %v314_v34  ;;  %v125_v40 = vrot.slane %v124_v10, 2 }
  0x7d   :  { %1359 = vmatpush1.bf16.msra.mxu0 %v2963_v43  ;;  %v138_v32 = vrot.slane %v137_v52, 2  ;;  %v190_v48 = vrot.slane %v189_v58, 2  ;;  %v214_v53 = vrot.slane %v213_v41, 4  ;;  %v176_v34 = vmax.f32 %v3971_v26, %v175_v33  ;;  %v2960_v43 = vld [vmem:[#allocation5 + $0x2e8] ss:$16 sps:$4 sm:$0xff]  }
  0x7e   :  { %v335_v17 = vmul.f32 0.015625, %v266_v13  ;;  %1360 = vmatprep.subr.bf16.mxu0 %v2971_v23  ;;  %v163_v55 = vmax.f32 %v161_v60, %v162_v38  ;;  %v317_v56 = vrot.slane %v316_v1, 1  ;;  %v126_v63 = vmax.f32 %v124_v10, %v125_v40  ;;  %v2987_v60 = vld [vmem:[#allocation5 + $0x48] ss:$16 sps:$4 sm:$0xff]   ;;  %v3019_v33 = vld [vmem:[#allocation5 + $0x1ac] ss:$16 sps:$4 sm:$0xff]  }
  0x7f   :  { %v139_v35 = vmax.f32 %v137_v52, %v138_v32  ;;  %v191_v18 = vmax.f32 %v189_v58, %v190_v48  ;;  %v215_v3 = vmax.f32 %v213_v41, %v214_v53  ;;  %v150_v44 = vmax.f32 %v3650_v62, %v149_v27  ;;  %v2966_v62 = vld [vmem:[#allocation5 + $0x2c8] ss:$16 sps:$4 sm:$0xff]   ;;  %v2974_v32 = vld [vmem:[#allocation5 + $0x2ac] ss:$16 sps:$4 sm:$0xff]  }
  0x80   :  { %v343_v25 = vpack.c.bf16 %v335_v17, %v335_v17  ;;  %v164_v49 = vrot.slane %v163_v55, 2  ;;  %v318_v30 = vadd.f32 %v317_v56, %v316_v1  ;;  %v127_v19 = vrot.slane %v126_v63, 1  ;;  %v2993_v17 = vld [vmem:[#allocation5 + $0x28] ss:$16 sps:$4 sm:$0xff]   ;;  %v3001_v56 = vld [vmem:[#allocation5 + $0xc] ss:$16 sps:$4 sm:$0xff]  }
  0x81   :  { %1361 = vmatpush1.bf16.msra.mxu0 %v2969_v2  ;;  %v140_v6 = vrot.slane %v139_v35, 1  ;;  %v192_v14 = vrot.slane %v191_v18, 1  ;;  %v216_v20 = vrot.slane %v215_v3, 2  ;;  %v177_v31 = vrot.slane %v176_v34, 2  ;;  %v3011_v26 = vld [vmem:[#allocation5 + $0x1c8] ss:$16 sps:$4 sm:$0xff]  }
  0x82   :  { %1362 = vmatprep.subr.bf16.mxu0 %v2977_v46  ;;  %v165_v54 = vmax.f32 %v163_v55, %v164_v49  ;;  %v339_v28 = vmul.f32 0.015625, %v318_v30  ;;  %v615_v0 = vunpack.c.l.b16 %v343_v25  ;;  %v128_v52 = vmax.f32 %v126_v63, %v127_v19  ;;  %v2972_v49 = vld [vmem:[#allocation5 + $0x2a8] ss:$16 sps:$4 sm:$0xff]   ;;  %v2998_v19 = vld [vmem:[#allocation5 + $0x22c] ss:$16 sps:$4 sm:$0xff]  }
  0x83   :  { %v141_v16 = vmax.f32 %v139_v35, %v140_v6  ;;  %v193_v5 = vmax.f32 %v191_v18, %v192_v14  ;;  %v217_v8 = vmax.f32 %v215_v3, %v216_v20  ;;  %v178_v38 = vmax.f32 %v176_v34, %v177_v31  ;;  %v2999_v6 = vld [vmem:[#allocation5 + $0x8] ss:$16 sps:$4 sm:$0xff]   ;;  %v2986_v20 = vld [vmem:[#allocation5 + $0x26c] ss:$16 sps:$4 sm:$0xff]  }
  0x84   :  { %v166_v47 = vrot.slane %v165_v54, 1  ;;  %v347_v9 = vpack.c.bf16 %v339_v28, %v339_v28  ;;  %v151_v1 = vrot.slane %v150_v44, 2  ;;  %v201_v2 = vrot.slane %v3660_v61, 4  ;;  %v3017_v27 = vld [vmem:[#allocation5 + $0x1a8] ss:$16 sps:$4 sm:$0xff]  }
  0x85   :  { %1363 = vmatpush1.bf16.msra.mxu0 %v2975_v59  ;;  %v221_v36 = vpack.c.bf16 %v141_v16, %v141_v16  ;;  %v225_v29 = vpack.c.bf16 %v193_v5, %v193_v5  ;;  %v218_v42 = vrot.slane %v217_v8, 1  ;;  %v179_v48 = vrot.slane %v178_v38, 1  ;;  %v2980_v59 = vld [vmem:[#allocation5 + $0x28c] ss:$16 sps:$4 sm:$0xff]   ;;  %v3023_v34 = vld [vmem:[#allocation5 + $0x188] ss:$16 sps:$4 sm:$0xff]  }
  0x86   :  { %1364 = vmatprep.subr.bf16.mxu0 %v2983_v4  ;;  %v167_v39 = vmax.f32 %v165_v54, %v166_v47  ;;  %v619_v22 = vunpack.c.l.b16 %v347_v9  ;;  %v220_v55 = vpack.c.bf16 %v128_v52, %v128_v52  ;;  %v152_v10 = vmax.f32 %v150_v44, %v151_v1  ;;  %v3007_v54 = vld [vmem:[#allocation5 + $0x1ec] ss:$16 sps:$4 sm:$0xff]   ;;  %v2984_v9 = vld [vmem:[#allocation5 + $0x268] ss:$16 sps:$4 sm:$0xff]  }
  0x87   :  { %v1447_v12 = vunpack.c.l.b16 %v221_v36  ;;  %v1451_v24 = vunpack.c.l.b16 %v225_v29  ;;  %v219_v50 = vmax.f32 %v217_v8, %v218_v42  ;;  %v202_v35 = vmax.f32 %v3660_v61, %v201_v2  ;;  %v3013_v47 = vld [vmem:[#allocation5 + $0x1cc] ss:$16 sps:$4 sm:$0xff]   ;;  %v2990_v29 = vld [vmem:[#allocation5 + $0x248] ss:$16 sps:$4 sm:$0xff]   ;;  %v3055_v2 = vld [vmem:[#allocation2 + $0xe4] ss:$16 sps:$4 sm:$0xff]  }
  0x88   :  { %v223_v37 = vpack.c.bf16 %v167_v39, %v167_v39  ;;  %v624_v23 = vsel %vm621_vm0, %v619_v22, %v615_v0  ;;  %v180_v25 = vmax.f32 %v178_v38, %v179_v48  ;;  %v153_v18 = vrot.slane %v152_v10, 1  ;;  %v3005_v0 = vld [vmem:[#allocation5 + $0x1e8] ss:$16 sps:$4 sm:$0xff]   ;;  %v2992_v8 = vld [vmem:[#allocation5 + $0x24c] ss:$16 sps:$4 sm:$0xff]  }
  0x89   :  { %1365 = vmatpush1.bf16.msra.mxu0 %v2981_v21  ;;  %v3705_v41 = vpack.c.b16 %v624_v23, %v624_v23  ;;  %v3708_v51 = vsel %vm621_vm0, %v1451_v24, %v1447_v12  ;;  %v227_v13 = vpack.c.bf16 %v219_v50, %v219_v50  ;;  %v203_v30 = vrot.slane %v202_v35, 2  ;;  %v3025_v22 = vld [vmem:[#allocation5 + $0x18c] ss:$16 sps:$4 sm:$0xff]   ;;  %v2996_v12 = vld [vmem:[#allocation5 + $0x228] ss:$16 sps:$4 sm:$0xff]  }
  0x8a   :  { %1366 = vmatprep.subr.bf16.mxu0 %v2989_v7  ;;  %v1449_v58 = vunpack.c.l.b16 %v223_v37  ;;  %v224_v3 = vpack.c.bf16 %v180_v25, %v180_v25  ;;  %v1446_v4 = vunpack.c.l.b16 %v220_v55  ;;  %v154_v14 = vmax.f32 %v152_v10, %v153_v18  ;;  %v3004_v42 = vld [vmem:[#allocation5 + $0x20c] ss:$16 sps:$4 sm:$0xff]   ;;  %v3002_v24 = vld [vmem:[#allocation5 + $0x208] ss:$16 sps:$4 sm:$0xff]   ;;  %v3061_v48 = vld [vmem:[#allocation2 + $0xc4] ss:$16 sps:$4 sm:$0xff]  }
  0x8b   :  { %1348 = vmatmul.mubr.bf16.vlgmr.msra.gmra.mxu1 %v3705_v41  ;;  %v1453_v46 = vunpack.c.l.b16 %v227_v13  ;;  %v204_v61 = vmax.f32 %v202_v35, %v203_v30  ;;  %v3010_v37 = vld [vmem:[#allocation5 + $0x3ec] ss:$16 sps:$4 sm:$0xff]   ;;  %v3029_v44 = vld [vmem:[#allocation5 + $0x168] ss:$16 sps:$4 sm:$0xff]   ;;  %v3725_v55 = vpack.c.b16 %v3708_v51, %v3708_v51  ;;  %v3059_v35 = vld [vmem:[#allocation2 + $0xc0] ss:$16 sps:$4 sm:$0xff]  }
  0x8c   :  { %1398 = vmatpush1.bf16.msra.mxu1 %v2960_v43  ;;  %1429 = vmatprep.mubr.bf16.mxu1 %v3662_v57  ;;  %v1450_v40 = vunpack.c.l.b16 %v224_v3  ;;  %v2978_v57 = vld [vmem:[#allocation5 + $0x288] ss:$16 sps:$4 sm:$0xff]   ;;  %v222_v16 = vpack.c.bf16 %v154_v14, %v154_v14  ;;  %v3031_v43 = vld [vmem:[#allocation5 + $0x16c] ss:$16 sps:$4 sm:$0xff]   ;;  %v3067_v25 = vld [vmem:[#allocation2 + $0xa4] ss:$16 sps:$4 sm:$0xff]  }
  0x8d   :  { %1367 = vmatpush1.bf16.msra.mxu0 %v2987_v60  ;;  %1399 = vmatprep.subr.bf16.mxu1 %v2968_v45  ;;  %v3715_v53 = vsel %vm621_vm0, %v1453_v46, %v1449_v58  ;;  %v205_v28 = vrot.slane %v204_v61, 1  ;;  %v3037_v23 = vld [vmem:[#allocation5 + $0x14c] ss:$16 sps:$4 sm:$0xff]   ;;  %v3008_v45 = vld [vmem:[#allocation5 + $0x3e8] ss:$16 sps:$4 sm:$0xff]  }
  0x8e   :  { %1368 = vmatprep.subr.bf16.mxu0 %v2995_v11  ;;  %v3718_v5 = vsel %vm621_vm0, %v1450_v40, %v1446_v4  ;;  %v1448_v36 = vunpack.c.l.b16 %v222_v16  ;;  %v3016_v60 = vld [vmem:[#allocation5 + $0x3cc] ss:$16 sps:$4 sm:$0xff]   ;;  %v3035_v50 = vld [vmem:[#allocation5 + $0x148] ss:$16 sps:$4 sm:$0xff]   ;;  %v3053_v46 = vld [vmem:[#allocation2 + $0xe0] ss:$16 sps:$4 sm:$0xff]  }
  0x8f   :  { %v206_v63 = vmax.f32 %v204_v61, %v205_v28  ;;  %v3043_v52 = vld [vmem:[#allocation5 + $0x12c] ss:$16 sps:$4 sm:$0xff]   ;;  %v3014_v31 = vld [vmem:[#allocation5 + $0x3c8] ss:$16 sps:$4 sm:$0xff]   ;;  %v3065_v30 = vld [vmem:[#allocation2 + $0xa0] ss:$16 sps:$4 sm:$0xff]  }
  0x90   :  { %1400 = vmatpush1.bf16.msra.mxu1 %v2966_v62  ;;  %v3022_v11 = vld [vmem:[#allocation5 + $0x3ac] ss:$16 sps:$4 sm:$0xff]   ;;  %v3041_v13 = vld [vmem:[#allocation5 + $0x128] ss:$16 sps:$4 sm:$0xff]   ;;  %v3073_v51 = vld [vmem:[#allocation2 + $0x84] ss:$16 sps:$4 sm:$0xff]  }
  0x91   :  { %1369 = vmatpush1.bf16.msra.mxu0 %v2993_v17  ;;  %1401 = vmatprep.subr.bf16.mxu1 %v2974_v32  ;;  %v226_v21 = vpack.c.bf16 %v206_v63, %v206_v63  ;;  %v3049_v58 = vld [vmem:[#allocation5 + $0x10c] ss:$16 sps:$4 sm:$0xff]   ;;  %v3020_v38 = vld [vmem:[#allocation5 + $0x3a8] ss:$16 sps:$4 sm:$0xff]   ;;  %v3079_v3 = vld [vmem:[#allocation2 + $0x64] ss:$16 sps:$4 sm:$0xff]  }
  0x92   :  { %1370 = vmatprep.subr.bf16.mxu0 %v3001_v56  ;;  %v3028_v1 = vld [vmem:[#allocation5 + $0x38c] ss:$16 sps:$4 sm:$0xff]   ;;  %v3047_v62 = vld [vmem:[#allocation5 + $0x108] ss:$16 sps:$4 sm:$0xff]   ;;  %v3058_v14 = vld [vmem:[#allocation2 + $0x2e4] ss:$16 sps:$4 sm:$0xff]  }
  0x93   :  { %v1452_v7 = vunpack.c.l.b16 %v226_v21  ;;  %v3026_v32 = vld [vmem:[#allocation5 + $0x388] ss:$16 sps:$4 sm:$0xff]   ;;  %v3034_v17 = vld [vmem:[#allocation5 + $0x36c] ss:$16 sps:$4 sm:$0xff]   ;;  %v3085_v61 = vld [vmem:[#allocation2 + $0x44] ss:$16 sps:$4 sm:$0xff]  }
  0x94   :  { %1402 = vmatpush1.bf16.msra.mxu1 %v2972_v49  ;;  %v3032_v10 = vld [vmem:[#allocation5 + $0x368] ss:$16 sps:$4 sm:$0xff]   ;;  %v3040_v56 = vld [vmem:[#allocation5 + $0x34c] ss:$16 sps:$4 sm:$0xff]   ;;  %v3056_v40 = vld [vmem:[#allocation2 + $0x2e0] ss:$16 sps:$4 sm:$0xff]  }
  0x95   :  { %1371 = vmatpush1.bf16.msra.mxu0 %v2999_v6  ;;  %1403 = vmatprep.subr.bf16.mxu1 %v2980_v59  ;;  %v3721_v39 = vsel %vm621_vm0, %v1452_v7, %v1448_v36  ;;  %v3038_v18 = vld [vmem:[#allocation5 + $0x348] ss:$16 sps:$4 sm:$0xff]   ;;  %v3046_v49 = vld [vmem:[#allocation5 + $0x32c] ss:$16 sps:$4 sm:$0xff]   ;;  %v3071_v6 = vld [vmem:[#allocation2 + $0x80] ss:$16 sps:$4 sm:$0xff]  }
  0x96   :  { %1372 = vmatprep.subr.bf16.mxu0 %v3007_v54  ;;  %v3044_v59 = vld [vmem:[#allocation5 + $0x328] ss:$16 sps:$4 sm:$0xff]   ;;  %v3077_v54 = vld [vmem:[#allocation2 + $0x60] ss:$16 sps:$4 sm:$0xff]   ;;  %v3091_v16 = vld [vmem:[#allocation2 + $0x24] ss:$16 sps:$4 sm:$0xff]  }
  0x97   :  { %v3050_v4 = vld [vmem:[#allocation5 + $0x308] ss:$16 sps:$4 sm:$0xff]   ;;  %v3083_v28 = vld [vmem:[#allocation2 + $0x40] ss:$16 sps:$4 sm:$0xff]   ;;  %v3076_v36 = vld [vmem:[#allocation2 + $0x284] ss:$16 sps:$4 sm:$0xff]  }
  0x98   :  { %1404 = vmatpush1.bf16.msra.mxu1 %v2978_v57  ;;  %v3064_v57 = vld [vmem:[#allocation2 + $0x2c4] ss:$16 sps:$4 sm:$0xff]   ;;  %v3089_v63 = vld [vmem:[#allocation2 + $0x20] ss:$16 sps:$4 sm:$0xff]  }
  0x99   :  { %1373 = vmatpush2.bf16.msra.mxu0 %v3005_v0  ;;  %1405 = vmatprep.subr.bf16.mxu1 %v2986_v20  ;;  %v3731_v20 = vpack.c.b16 %v3715_v53, %v3715_v53  ;;  %v3062_v0 = vld [vmem:[#allocation2 + $0x2c0] ss:$16 sps:$4 sm:$0xff]   ;;  %v3103_v53 = vld [vmem:[#allocation2 + $0x1e4] ss:$16 sps:$4 sm:$0xff]  }
  0x9a   :  { %1374 = vmatprep.subr.bf16.mxu0 %v3013_v47  ;;  %v3070_v47 = vld [vmem:[#allocation2 + $0x2a4] ss:$16 sps:$4 sm:$0xff]   ;;  %v3068_v21 = vld [vmem:[#allocation2 + $0x2a0] ss:$16 sps:$4 sm:$0xff]  }
  0x9b   :  { %v3109_v7 = vld [vmem:[#allocation2 + $0x1c4] ss:$16 sps:$4 sm:$0xff]  }
  0x9c   :  { %1406 = vmatpush1.bf16.msra.mxu1 %v2984_v9  ;;  %v3097_v9 = vld [vmem:[#allocation2 + $0x4] ss:$16 sps:$4 sm:$0xff]  }
  0x9d   :  { %1375 = vmatpush2.bf16.msra.mxu0 %v3011_v26  ;;  %1407 = vmatprep.subr.bf16.mxu1 %v2992_v8  ;;  %v3095_v8 = vld [vmem:[#allocation2] ss:$16 sps:$4 sm:$0xff]  }
  0x9e   :  { %1376 = vmatprep.subr.bf16.mxu0 %v3019_v33  ;;  %v3074_v26 = vld [vmem:[#allocation2 + $0x280] ss:$16 sps:$4 sm:$0xff]  }
  0x9f   :  { %v3101_v33 = vld [vmem:[#allocation2 + $0x1e0] ss:$16 sps:$4 sm:$0xff]  }
  0xa0   :  { %1408 = vmatpush1.bf16.msra.mxu1 %v2990_v29  ;;  %v3080_v29 = vld [vmem:[#allocation2 + $0x260] ss:$16 sps:$4 sm:$0xff]  }
  0xa1   :  { %1377 = vmatpush2.bf16.msra.mxu0 %v3017_v27  ;;  %1409 = vmatprep.subr.bf16.mxu1 %v2998_v19  ;;  %v3107_v19 = vld [vmem:[#allocation2 + $0x1c0] ss:$16 sps:$4 sm:$0xff]   ;;  %v3088_v27 = vld [vmem:[#allocation2 + $0x244] ss:$16 sps:$4 sm:$0xff]  }
  0xa2   :  { %1378 = vmatprep.subr.bf16.mxu0 %v3025_v22  ;;  %v3115_v22 = vld [vmem:[#allocation2 + $0x1a4] ss:$16 sps:$4 sm:$0xff]  }
  0xa4   :  { %1410 = vmatpush1.bf16.msra.mxu1 %v2996_v12  ;;  %v3086_v12 = vld [vmem:[#allocation2 + $0x240] ss:$16 sps:$4 sm:$0xff]  }
  0xa5   :  { %1379 = vmatpush2.bf16.msra.mxu0 %v3023_v34  ;;  %1411 = vmatprep.subr.bf16.mxu1 %v3004_v42  ;;  %v3113_v42 = vld [vmem:[#allocation2 + $0x1a0] ss:$16 sps:$4 sm:$0xff]   ;;  %v3094_v34 = vld [vmem:[#allocation2 + $0x224] ss:$16 sps:$4 sm:$0xff]  }
  0xa6   :  { %1380 = vmatprep.subr.bf16.mxu0 %v3031_v43  ;;  %v3121_v43 = vld [vmem:[#allocation2 + $0x184] ss:$16 sps:$4 sm:$0xff]  }
  0xa8   :  { %1412 = vmatpush1.bf16.msra.mxu1 %v3002_v24  ;;  %v3092_v24 = vld [vmem:[#allocation2 + $0x220] ss:$16 sps:$4 sm:$0xff]  }
  0xa9   :  { %1381 = vmatpush2.bf16.msra.mxu0 %v3029_v44  ;;  %1413 = vmatprep.subr.bf16.mxu1 %v3010_v37  ;;  %v3119_v37 = vld [vmem:[#allocation2 + $0x180] ss:$16 sps:$4 sm:$0xff]   ;;  %v3100_v44 = vld [vmem:[#allocation2 + $0x204] ss:$16 sps:$4 sm:$0xff]  }
  0xaa   :  { %1382 = vmatprep.subr.bf16.mxu0 %v3037_v23  ;;  %v3127_v23 = vld [vmem:[#allocation2 + $0x164] ss:$16 sps:$4 sm:$0xff]  }
  0xac   :  { %1414 = vmatpush2.bf16.msra.mxu1 %v3008_v45  ;;  %v3098_v45 = vld [vmem:[#allocation2 + $0x200] ss:$16 sps:$4 sm:$0xff]  }
  0xad   :  { %1383 = vmatpush2.bf16.msra.mxu0 %v3035_v50  ;;  %1415 = vmatprep.subr.bf16.mxu1 %v3016_v60  ;;  %v3125_v60 = vld [vmem:[#allocation2 + $0x160] ss:$16 sps:$4 sm:$0xff]   ;;  %v3106_v50 = vld [vmem:[#allocation2 + $0x3e4] ss:$16 sps:$4 sm:$0xff]  }
  0xae   :  { %1384 = vmatprep.subr.bf16.mxu0 %v3043_v52  ;;  %v3133_v52 = vld [vmem:[#allocation2 + $0x144] ss:$16 sps:$4 sm:$0xff]  }
  0xb0   :  { %1416 = vmatpush2.bf16.msra.mxu1 %v3014_v31  ;;  %v3104_v31 = vld [vmem:[#allocation2 + $0x3e0] ss:$16 sps:$4 sm:$0xff]  }
  0xb1   :  { %1385 = vmatpush2.bf16.msra.mxu0 %v3041_v13  ;;  %1417 = vmatprep.subr.bf16.mxu1 %v3022_v11  ;;  %v3131_v11 = vld [vmem:[#allocation2 + $0x140] ss:$16 sps:$4 sm:$0xff]   ;;  %v3112_v13 = vld [vmem:[#allocation2 + $0x3c4] ss:$16 sps:$4 sm:$0xff]  }
  0xb2   :  { %1386 = vmatprep.subr.bf16.mxu0 %v3049_v58  ;;  %v3139_v58 = vld [vmem:[#allocation2 + $0x124] ss:$16 sps:$4 sm:$0xff]  }
  0xb4   :  { %1418 = vmatpush2.bf16.msra.mxu1 %v3020_v38  ;;  %v3110_v38 = vld [vmem:[#allocation2 + $0x3c0] ss:$16 sps:$4 sm:$0xff]  }
  0xb5   :  { %1387 = vmatpush2.bf16.msra.mxu0 %v3047_v62  ;;  %1419 = vmatprep.subr.bf16.mxu1 %v3028_v1  ;;  %v3137_v1 = vld [vmem:[#allocation2 + $0x120] ss:$16 sps:$4 sm:$0xff]   ;;  %v3118_v62 = vld [vmem:[#allocation2 + $0x3a4] ss:$16 sps:$4 sm:$0xff]  }
  0xb6   :  { %2106 = vmatprep.subr.bf16.mxu0 %v3055_v2  ;;  %v3145_v2 = vld [vmem:[#allocation2 + $0x104] ss:$16 sps:$4 sm:$0xff]  }
  0xb8   :  { %1389 = vmatmul.mubr.bf16.vlgmr.msra.gmra.mxu0 %v3685_v15  ;;  %1420 = vmatpush2.bf16.msra.mxu1 %v3026_v32  ;;  %v3052_v15 = vld [vmem:[#allocation5 + $0x30c] ss:$16 sps:$4 sm:$0xff]   ;;  %v3116_v32 = vld [vmem:[#allocation2 + $0x3a0] ss:$16 sps:$4 sm:$0xff]  }
  0xb9   :  { %2107 = vmatpush1.bf16.msra.mxu0 %v3053_v46  ;;  %1421 = vmatprep.subr.bf16.mxu1 %v3034_v17  ;;  %v3143_v17 = vld [vmem:[#allocation2 + $0x100] ss:$16 sps:$4 sm:$0xff]   ;;  %v3124_v46 = vld [vmem:[#allocation2 + $0x384] ss:$16 sps:$4 sm:$0xff]  }
  0xba   :  { %2108 = vmatprep.subr.bf16.mxu0 %v3061_v48  ;;  %2138 = vmatprep.mubr.bf16.mxu0 %v3725_v55  ;;  %v3151_v48 = vld [vmem:[#allocation2 + $0xec] ss:$16 sps:$4 sm:$0xff]  }
  0xbc   :  { %1422 = vmatpush2.bf16.msra.mxu1 %v3032_v10  ;;  %v3737_v10 = vpack.c.b16 %v3718_v5, %v3718_v5  ;;  %v3134_v5 = vld [vmem:[#allocation2 + $0x340] ss:$16 sps:$4 sm:$0xff]  }
  0xbd   :  { %2109 = vmatpush1.bf16.msra.mxu0 %v3059_v35  ;;  %1423 = vmatprep.subr.bf16.mxu1 %v3040_v56  ;;  %v3122_v56 = vld [vmem:[#allocation2 + $0x380] ss:$16 sps:$4 sm:$0xff]   ;;  %v3149_v35 = vld [vmem:[#allocation2 + $0xe8] ss:$16 sps:$4 sm:$0xff]  }
  0xbe   :  { %2110 = vmatprep.subr.bf16.mxu0 %v3067_v25  ;;  %v3130_v25 = vld [vmem:[#allocation2 + $0x364] ss:$16 sps:$4 sm:$0xff]  }
  0xc0   :  { %1424 = vmatpush2.bf16.msra.mxu1 %v3038_v18  ;;  %v3157_v18 = vld [vmem:[#allocation2 + $0xcc] ss:$16 sps:$4 sm:$0xff]  }
  0xc1   :  { %2111 = vmatpush1.bf16.msra.mxu0 %v3065_v30  ;;  %1425 = vmatprep.subr.bf16.mxu1 %v3046_v49  ;;  %v3128_v49 = vld [vmem:[#allocation2 + $0x360] ss:$16 sps:$4 sm:$0xff]   ;;  %v3155_v30 = vld [vmem:[#allocation2 + $0xc8] ss:$16 sps:$4 sm:$0xff]  }
  0xc2   :  { %2112 = vmatprep.subr.bf16.mxu0 %v3073_v51  ;;  %v3136_v51 = vld [vmem:[#allocation2 + $0x344] ss:$16 sps:$4 sm:$0xff]  }
  0xc4   :  { %1426 = vmatpush2.bf16.msra.mxu1 %v3044_v59  ;;  %v3163_v59 = vld [vmem:[#allocation2 + $0xac] ss:$16 sps:$4 sm:$0xff]  }
  0xc5   :  { %2113 = vmatpush1.bf16.msra.mxu0 %v3071_v6  ;;  %1427 = vmatprep.subr.bf16.mxu1 %v3052_v15  ;;  %v3161_v15 = vld [vmem:[#allocation2 + $0xa8] ss:$16 sps:$4 sm:$0xff]   ;;  %v3142_v6 = vld [vmem:[#allocation2 + $0x324] ss:$16 sps:$4 sm:$0xff]  }
  0xc6   :  { %2114 = vmatprep.subr.bf16.mxu0 %v3079_v3  ;;  %v3169_v3 = vld [vmem:[#allocation2 + $0x8c] ss:$16 sps:$4 sm:$0xff]  }
  0xc8   :  { %1428 = vmatpush2.bf16.msra.mxu1 %v3050_v4  ;;  %v3140_v4 = vld [vmem:[#allocation2 + $0x320] ss:$16 sps:$4 sm:$0xff]  }
  0xc9   :  { %2115 = vmatpush1.bf16.msra.mxu0 %v3077_v54  ;;  %2147 = vmatprep.subr.bf16.mxu1 %v3058_v14  ;;  %v3167_v14 = vld [vmem:[#allocation2 + $0x88] ss:$16 sps:$4 sm:$0xff]   ;;  %v3148_v54 = vld [vmem:[#allocation2 + $0x304] ss:$16 sps:$4 sm:$0xff]  }
  0xca   :  { %2116 = vmatprep.subr.bf16.mxu0 %v3085_v61  ;;  %v3175_v61 = vld [vmem:[#allocation2 + $0x6c] ss:$16 sps:$4 sm:$0xff]  }
  0xcb   :  { %1430 = vmatmul.mubr.bf16.vlgmr.msra.gmra.mxu1 %v3705_v41  ;;  %v3082_v41 = vld [vmem:[#allocation2 + $0x264] ss:$16 sps:$4 sm:$0xff]  }
  0xcc   :  { %2148 = vmatpush1.bf16.msra.mxu1 %v3056_v40  ;;  %2179 = vmatprep.mubr.bf16.mxu1 %v3731_v20  ;;  %v3146_v40 = vld [vmem:[#allocation2 + $0x300] ss:$16 sps:$4 sm:$0xff]  }
  0xcd   :  { %2117 = vmatpush1.bf16.msra.mxu0 %v3083_v28  ;;  %2149 = vmatprep.subr.bf16.mxu1 %v3064_v57  ;;  %v3154_v57 = vld [vmem:[#allocation2 + $0x2ec] ss:$16 sps:$4 sm:$0xff]  }
  0xce   :  { %2118 = vmatprep.subr.bf16.mxu0 %v3091_v16  ;;  %v3181_v28 = vld [vmem:[#allocation2 + $0x4c] ss:$16 sps:$4 sm:$0xff]   ;;  %v3743_v16 = vpack.c.b16 %v3721_v39, %v3721_v39  ;;  %v3164_v39 = vld [vmem:[#allocation2 + $0x2a8] ss:$16 sps:$4 sm:$0xff]  }
  0xd0   :  { %2150 = vmatpush1.bf16.msra.mxu1 %v3062_v0  ;;  %v3152_v0 = vld [vmem:[#allocation2 + $0x2e8] ss:$16 sps:$4 sm:$0xff]  }
  0xd1   :  { %2119 = vmatpush1.bf16.msra.mxu0 %v3089_v63  ;;  %2151 = vmatprep.subr.bf16.mxu1 %v3070_v47  ;;  %v3179_v47 = vld [vmem:[#allocation2 + $0x48] ss:$16 sps:$4 sm:$0xff]   ;;  %v3160_v63 = vld [vmem:[#allocation2 + $0x2cc] ss:$16 sps:$4 sm:$0xff]  }
  0xd2   :  { %2120 = vmatprep.subr.bf16.mxu0 %v3097_v9  ;;  %v3187_v9 = vld [vmem:[#allocation2 + $0x2c] ss:$16 sps:$4 sm:$0xff]  }
  0xd4   :  { %2152 = vmatpush1.bf16.msra.mxu1 %v3068_v21  ;;  %v3158_v21 = vld [vmem:[#allocation2 + $0x2c8] ss:$16 sps:$4 sm:$0xff]  }
  0xd5   :  { %2121 = vmatpush1.bf16.msra.mxu0 %v3095_v8  ;;  %2153 = vmatprep.subr.bf16.mxu1 %v3076_v36  ;;  %v3185_v36 = vld [vmem:[#allocation2 + $0x28] ss:$16 sps:$4 sm:$0xff]   ;;  %v3166_v8 = vld [vmem:[#allocation2 + $0x2ac] ss:$16 sps:$4 sm:$0xff]  }
  0xd6   :  { %2122 = vmatprep.subr.bf16.mxu0 %v3103_v53  ;;  %v3193_v53 = vld [vmem:[#allocation2 + $0xc] ss:$16 sps:$4 sm:$0xff]  }
  0xd8   :  { %2154 = vmatpush1.bf16.msra.mxu1 %v3074_v26  ;;  %v3191_v26 = vld [vmem:[#allocation2 + $0x8] ss:$16 sps:$4 sm:$0xff]  }
  0xd9   :  { %2123 = vmatpush2.bf16.msra.mxu0 %v3101_v33  ;;  %2155 = vmatprep.subr.bf16.mxu1 %v3082_v41  ;;  %v3172_v41 = vld [vmem:[#allocation2 + $0x28c] ss:$16 sps:$4 sm:$0xff]  }
  0xda   :  { %2124 = vmatprep.subr.bf16.mxu0 %v3109_v7  ;;  %v3199_v33 = vld [vmem:[#allocation2 + $0x1ec] ss:$16 sps:$4 sm:$0xff]   ;;  %v3170_v7 = vld [vmem:[#allocation2 + $0x288] ss:$16 sps:$4 sm:$0xff]  }
  0xdc   :  { %2156 = vmatpush1.bf16.msra.mxu1 %v3080_v29  ;;  %v3197_v29 = vld [vmem:[#allocation2 + $0x1e8] ss:$16 sps:$4 sm:$0xff]  }
  0xdd   :  { %2125 = vmatpush2.bf16.msra.mxu0 %v3107_v19  ;;  %2157 = vmatprep.subr.bf16.mxu1 %v3088_v27  ;;  %v3178_v19 = vld [vmem:[#allocation2 + $0x26c] ss:$16 sps:$4 sm:$0xff]  }
  0xde   :  { %2126 = vmatprep.subr.bf16.mxu0 %v3115_v22  ;;  %v3205_v27 = vld [vmem:[#allocation2 + $0x1cc] ss:$16 sps:$4 sm:$0xff]   ;;  %v3176_v22 = vld [vmem:[#allocation2 + $0x268] ss:$16 sps:$4 sm:$0xff]  }
  0xe0   :  { %2158 = vmatpush1.bf16.msra.mxu1 %v3086_v12  ;;  %v3184_v12 = vld [vmem:[#allocation2 + $0x24c] ss:$16 sps:$4 sm:$0xff]  }
  0xe1   :  { %2127 = vmatpush2.bf16.msra.mxu0 %v3113_v42  ;;  %2159 = vmatprep.subr.bf16.mxu1 %v3094_v34  ;;  %v3211_v42 = vld [vmem:[#allocation2 + $0x1ac] ss:$16 sps:$4 sm:$0xff]   ;;  %v3182_v34 = vld [vmem:[#allocation2 + $0x248] ss:$16 sps:$4 sm:$0xff]  }
  0xe2   :  { %2128 = vmatprep.subr.bf16.mxu0 %v3121_v43  ;;  %v3209_v43 = vld [vmem:[#allocation2 + $0x1a8] ss:$16 sps:$4 sm:$0xff]  }
  0xe4   :  { %2160 = vmatpush1.bf16.msra.mxu1 %v3092_v24  ;;  %v3190_v24 = vld [vmem:[#allocation2 + $0x22c] ss:$16 sps:$4 sm:$0xff]  }
  0xe5   :  { %2129 = vmatpush2.bf16.msra.mxu0 %v3119_v37  ;;  %2161 = vmatprep.subr.bf16.mxu1 %v3100_v44  ;;  %v3217_v37 = vld [vmem:[#allocation2 + $0x18c] ss:$16 sps:$4 sm:$0xff]   ;;  %v3188_v44 = vld [vmem:[#allocation2 + $0x228] ss:$16 sps:$4 sm:$0xff]  }
  0xe6   :  { %2130 = vmatprep.subr.bf16.mxu0 %v3127_v23  ;;  %v3215_v23 = vld [vmem:[#allocation2 + $0x188] ss:$16 sps:$4 sm:$0xff]  }
  0xe8   :  { %2162 = vmatpush1.bf16.msra.mxu1 %v3098_v45  ;;  %v3196_v45 = vld [vmem:[#allocation2 + $0x20c] ss:$16 sps:$4 sm:$0xff]  }
  0xe9   :  { %2131 = vmatpush2.bf16.msra.mxu0 %v3125_v60  ;;  %2163 = vmatprep.subr.bf16.mxu1 %v3106_v50  ;;  %v3223_v60 = vld [vmem:[#allocation2 + $0x16c] ss:$16 sps:$4 sm:$0xff]   ;;  %v3194_v50 = vld [vmem:[#allocation2 + $0x208] ss:$16 sps:$4 sm:$0xff]  }
  0xea   :  { %2132 = vmatprep.subr.bf16.mxu0 %v3133_v52  ;;  %v3221_v52 = vld [vmem:[#allocation2 + $0x168] ss:$16 sps:$4 sm:$0xff]  }
  0xec   :  { %2164 = vmatpush2.bf16.msra.mxu1 %v3104_v31  ;;  %v3202_v31 = vld [vmem:[#allocation2 + $0x3ec] ss:$16 sps:$4 sm:$0xff]  }
  0xed   :  { %2133 = vmatpush2.bf16.msra.mxu0 %v3131_v11  ;;  %2165 = vmatprep.subr.bf16.mxu1 %v3112_v13  ;;  %v3229_v11 = vld [vmem:[#allocation2 + $0x14c] ss:$16 sps:$4 sm:$0xff]   ;;  %v3200_v13 = vld [vmem:[#allocation2 + $0x3e8] ss:$16 sps:$4 sm:$0xff]  }
  0xee   :  { %2134 = vmatprep.subr.bf16.mxu0 %v3139_v58  ;;  %v3227_v58 = vld [vmem:[#allocation2 + $0x148] ss:$16 sps:$4 sm:$0xff]  }
  0xf0   :  { %2166 = vmatpush2.bf16.msra.mxu1 %v3110_v38  ;;  %v3208_v38 = vld [vmem:[#allocation2 + $0x3cc] ss:$16 sps:$4 sm:$0xff]  }
  0xf1   :  { %2135 = vmatpush2.bf16.msra.mxu0 %v3137_v1  ;;  %2167 = vmatprep.subr.bf16.mxu1 %v3118_v62  ;;  %v3235_v1 = vld [vmem:[#allocation2 + $0x12c] ss:$16 sps:$4 sm:$0xff]   ;;  %v3206_v62 = vld [vmem:[#allocation2 + $0x3c8] ss:$16 sps:$4 sm:$0xff]  }
  0xf2   :  { %2136 = vmatprep.subr.bf16.mxu0 %v3145_v2  ;;  %v3233_v2 = vld [vmem:[#allocation2 + $0x128] ss:$16 sps:$4 sm:$0xff]  }
  0xf4   :  { %2168 = vmatpush2.bf16.msra.mxu1 %v3116_v32  ;;  %v3214_v32 = vld [vmem:[#allocation2 + $0x3ac] ss:$16 sps:$4 sm:$0xff]  }
  0xf5   :  { %2137 = vmatpush2.bf16.msra.mxu0 %v3143_v17  ;;  %2169 = vmatprep.subr.bf16.mxu1 %v3124_v46  ;;  %v3241_v17 = vld [vmem:[#allocation2 + $0x10c] ss:$16 sps:$4 sm:$0xff]   ;;  %v3212_v46 = vld [vmem:[#allocation2 + $0x3a8] ss:$16 sps:$4 sm:$0xff]  }
  0xf6   :  { %2188 = vmatprep.subr.bf16.mxu0 %v3151_v48  ;;  %v3239_v48 = vld [vmem:[#allocation2 + $0x108] ss:$16 sps:$4 sm:$0xff]  }
  0xf8   :  { %2139 = vmatmul.mubr.bf16.vlgmr.msra.gmra.mxu0 %v3737_v10  ;;  %2170 = vmatpush2.bf16.msra.mxu1 %v3122_v56  ;;  %v3220_v56 = vld [vmem:[#allocation2 + $0x38c] ss:$16 sps:$4 sm:$0xff]  }
  0xf9   :  { %2189 = vmatpush1.bf16.msra.mxu0 %v3149_v35  ;;  %2171 = vmatprep.subr.bf16.mxu1 %v3130_v25  ;;  %v2331_v35 = vld [vmem:[%s3960_s4 + $0xf8] sm:$0xff] }
  0xfa   :  { %2190 = vmatprep.subr.bf16.mxu0 %v3157_v18  ;;  %2220 = vmatprep.mubr.bf16.mxu0 %v3725_v55  ;;  %v3173_v55 = vld [vmem:[#allocation2 + $0x68] ss:$16 sps:$4 sm:$0xff]   ;;  %v3226_v18 = vld [vmem:[#allocation2 + $0x36c] ss:$16 sps:$4 sm:$0xff]  }
  0xfb   :  { %v3218_v25 = vld [vmem:[#allocation2 + $0x388] ss:$16 sps:$4 sm:$0xff]  }
  0xfc   :  { %2172 = vmatpush2.bf16.msra.mxu1 %v3128_v49  ;;  %v2315_v49 = vld [vmem:[%s3960_s4 + $0x78] sm:$0xff] }
  0xfd   :  { %2191 = vmatpush1.bf16.msra.mxu0 %v3155_v30  ;;  %2173 = vmatprep.subr.bf16.mxu1 %v3136_v51  ;;  %v2330_v30 = vld [vmem:[%s3960_s4 + $0xf0] sm:$0xff] }
  0xfe   :  { %2192 = vmatprep.subr.bf16.mxu0 %v3163_v59  ;;  %v2314_v59 = vld [vmem:[%s3960_s4 + $0x70] sm:$0xff] }
 0x100   :  { %2174 = vmatpush2.bf16.msra.mxu1 %v3134_v5  ;;  %v3224_v5 = vld [vmem:[#allocation2 + $0x368] ss:$16 sps:$4 sm:$0xff]  }
 0x101   :  { %2193 = vmatpush1.bf16.msra.mxu0 %v3161_v15  ;;  %2175 = vmatprep.subr.bf16.mxu1 %v3142_v6  ;;  %v2329_v15 = vld [vmem:[%s3960_s4 + $0xe8] sm:$0xff] }
 0x102   :  { %2194 = vmatprep.subr.bf16.mxu0 %v3169_v3  ;;  %v3232_v6 = vld [vmem:[#allocation2 + $0x34c] ss:$16 sps:$4 sm:$0xff]  }
 0x104   :  { %2176 = vmatpush2.bf16.msra.mxu1 %v3140_v4  ;;  %v2313_v4 = vld [vmem:[%s3960_s4 + $0x68] sm:$0xff] }
 0x105   :  { %2195 = vmatpush1.bf16.msra.mxu0 %v3167_v14  ;;  %2177 = vmatprep.subr.bf16.mxu1 %v3148_v54  ;;  %v2312_v54 = vld [vmem:[%s3960_s4 + $0x60] sm:$0xff] }
 0x106   :  { %2196 = vmatprep.subr.bf16.mxu0 %v3175_v61  ;;  %v3230_v61 = vld [vmem:[#allocation2 + $0x348] ss:$16 sps:$4 sm:$0xff]  }
 0x108   :  { %2178 = vmatpush2.bf16.msra.mxu1 %v3146_v40  ;;  %v2327_v40 = vld [vmem:[%s3960_s4 + $0xd8] sm:$0xff] }
 0x109   :  { %2197 = vmatpush1.bf16.msra.mxu0 %v3173_v55  ;;  %2229 = vmatprep.subr.bf16.mxu1 %v3154_v57  ;;  %v3238_v55 = vld [vmem:[#allocation2 + $0x32c] ss:$16 sps:$4 sm:$0xff]  }
 0x10a   :  { %2198 = vmatprep.subr.bf16.mxu0 %v3181_v28  ;;  %v2311_v28 = vld [vmem:[%s3960_s4 + $0x58] sm:$0xff] }
 0x10b   :  { %2180 = vmatmul.mubr.bf16.vlgmr.msra.gmra.mxu1 %v3743_v16 }
 0x10c   :  { %2230 = vmatpush1.bf16.msra.mxu1 %v3152_v0  ;;  %2261 = vmatprep.mubr.bf16.mxu1 %v3731_v20  ;;  %v3203_v20 = vld [vmem:[#allocation2 + $0x1c8] ss:$16 sps:$4 sm:$0xff]   ;;  %v2326_v0 = vld [vmem:[%s3960_s4 + $0xd0] sm:$0xff] }
 0x10d   :  { %2199 = vmatpush1.bf16.msra.mxu0 %v3179_v47  ;;  %2231 = vmatprep.subr.bf16.mxu1 %v3160_v63  ;;  %v2310_v47 = vld [vmem:[%s3960_s4 + $0x50] sm:$0xff]  ;;  %v3236_v63 = vld [vmem:[#allocation2 + $0x328] ss:$16 sps:$4 sm:$0xff]  }
 0x10e   :  { %2200 = vmatprep.subr.bf16.mxu0 %v3187_v9  ;;  %v2325_v9 = vld [vmem:[%s3960_s4 + $0xc8] sm:$0xff] }
 0x110   :  { %2232 = vmatpush1.bf16.msra.mxu1 %v3158_v21  ;;  %v3244_v21 = vld [vmem:[#allocation2 + $0x30c] ss:$16 sps:$4 sm:$0xff]  }
 0x111   :  { %2201 = vmatpush1.bf16.msra.mxu0 %v3185_v36  ;;  %2233 = vmatprep.subr.bf16.mxu1 %v3166_v8  ;;  %v2309_v36 = vld [vmem:[%s3960_s4 + $0x48] sm:$0xff]  ;;  %v2324_v8 = vld [vmem:[%s3960_s4 + $0xc0] sm:$0xff] }
 0x112   :  { %2202 = vmatprep.subr.bf16.mxu0 %v3193_v53  ;;  %v2308_v53 = vld [vmem:[%s3960_s4 + $0x40] sm:$0xff] }
 0x114   :  { %2234 = vmatpush1.bf16.msra.mxu1 %v3164_v39  ;;  %v3242_v39 = vld [vmem:[#allocation2 + $0x308] ss:$16 sps:$4 sm:$0xff]  }
 0x115   :  { %2203 = vmatpush1.bf16.msra.mxu0 %v3191_v26  ;;  %2235 = vmatprep.subr.bf16.mxu1 %v3172_v41  ;;  %v2323_v26 = vld [vmem:[%s3960_s4 + $0xb8] sm:$0xff] }
 0x116   :  { %2204 = vmatprep.subr.bf16.mxu0 %v3199_v33  ;;  %v2307_v41 = vld [vmem:[%s3960_s4 + $0x38] sm:$0xff]  ;;  %v2322_v33 = vld [vmem:[%s3960_s4 + $0xb0] sm:$0xff] }
 0x118   :  { %2236 = vmatpush1.bf16.msra.mxu1 %v3170_v7  ;;  %v2306_v7 = vld [vmem:[%s3960_s4 + $0x30] sm:$0xff] }
 0x119   :  { %2205 = vmatpush2.bf16.msra.mxu0 %v3197_v29  ;;  %2237 = vmatprep.subr.bf16.mxu1 %v3178_v19  ;;  %v2321_v29 = vld [vmem:[%s3960_s4 + $0xa8] sm:$0xff] }
 0x11a   :  { %2206 = vmatprep.subr.bf16.mxu0 %v3205_v27  ;;  %v2305_v27 = vld [vmem:[%s3960_s4 + $0x28] sm:$0xff] }
 0x11c   :  { %2238 = vmatpush1.bf16.msra.mxu1 %v3176_v22 }
 0x11d   :  { %2207 = vmatpush2.bf16.msra.mxu0 %v3203_v20  ;;  %2239 = vmatprep.subr.bf16.mxu1 %v3184_v12  ;;  %v2320_v20 = vld [vmem:[%s3960_s4 + $0xa0] sm:$0xff] }
 0x11e   :  { %2208 = vmatprep.subr.bf16.mxu0 %v3211_v42  ;;  %v2304_v42 = vld [vmem:[%s3960_s4 + $0x20] sm:$0xff] }
 0x120   :  { %2240 = vmatpush1.bf16.msra.mxu1 %v3182_v34 }
 0x121   :  { %2209 = vmatpush2.bf16.msra.mxu0 %v3209_v43  ;;  %2241 = vmatprep.subr.bf16.mxu1 %v3190_v24  ;;  %v2303_v24 = vld [vmem:[%s3960_s4 + $0x18] sm:$0xff] }
 0x122   :  { %2210 = vmatprep.subr.bf16.mxu0 %v3217_v37  ;;  %v2318_v37 = vld [vmem:[%s3960_s4 + $0x90] sm:$0xff] }
 0x124   :  { %2242 = vmatpush1.bf16.msra.mxu1 %v3188_v44 }
 0x125   :  { %2211 = vmatpush2.bf16.msra.mxu0 %v3215_v23  ;;  %2243 = vmatprep.subr.bf16.mxu1 %v3196_v45  ;;  %v2302_v23 = vld [vmem:[%s3960_s4 + $0x10] sm:$0xff]  ;;  %v2317_v45 = vld [vmem:[%s3960_s4 + $0x88] sm:$0xff] }
 0x126   :  { %2212 = vmatprep.subr.bf16.mxu0 %v3223_v60  ;;  %v2301_v60 = vld [vmem:[%s3960_s4 + $0x8] sm:$0xff] }
 0x128   :  { %2244 = vmatpush1.bf16.msra.mxu1 %v3194_v50  ;;  %v2316_v50 = vld [vmem:[%s3960_s4 + $0x80] sm:$0xff] }
 0x129   :  { %2213 = vmatpush2.bf16.msra.mxu0 %v3221_v52  ;;  %2245 = vmatprep.subr.bf16.mxu1 %v3202_v31  ;;  %v2300_v52 = vld [vmem:[%s3960_s4] sm:$0xff]  ;;  %v2363_v31 = vld [vmem:[%s3960_s4 + $0x1f8] sm:$0xff] }
 0x12a   :  { %2214 = vmatprep.subr.bf16.mxu0 %v3229_v11  ;;  %v2347_v11 = vld [vmem:[%s3960_s4 + $0x178] sm:$0xff] }
 0x12c   :  { %2246 = vmatpush2.bf16.msra.mxu1 %v3200_v13  ;;  %v2362_v13 = vld [vmem:[%s3960_s4 + $0x1f0] sm:$0xff] }
 0x12d   :  { %2215 = vmatpush2.bf16.msra.mxu0 %v3227_v58  ;;  %2247 = vmatprep.subr.bf16.mxu1 %v3208_v38  ;;  %v2346_v58 = vld [vmem:[%s3960_s4 + $0x170] sm:$0xff]  ;;  %v2361_v38 = vld [vmem:[%s3960_s4 + $0x1e8] sm:$0xff] }
 0x12e   :  { %2216 = vmatprep.subr.bf16.mxu0 %v3235_v1  ;;  %v2345_v1 = vld [vmem:[%s3960_s4 + $0x168] sm:$0xff] }
 0x130   :  { %2248 = vmatpush2.bf16.msra.mxu1 %v3206_v62  ;;  %v2360_v62 = vld [vmem:[%s3960_s4 + $0x1e0] sm:$0xff] }
 0x131   :  { %2217 = vmatpush2.bf16.msra.mxu0 %v3233_v2  ;;  %2249 = vmatprep.subr.bf16.mxu1 %v3214_v32  ;;  %v2344_v2 = vld [vmem:[%s3960_s4 + $0x160] sm:$0xff]  ;;  %v2359_v32 = vld [vmem:[%s3960_s4 + $0x1d8] sm:$0xff] }
 0x132   :  { %2218 = vmatprep.subr.bf16.mxu0 %v3241_v17  ;;  %v2343_v17 = vld [vmem:[%s3960_s4 + $0x158] sm:$0xff] }
 0x134   :  { %2250 = vmatpush2.bf16.msra.mxu1 %v3212_v46  ;;  %v2358_v46 = vld [vmem:[%s3960_s4 + $0x1d0] sm:$0xff] }
 0x135   :  { %2219 = vmatpush2.bf16.msra.mxu0 %v3239_v48  ;;  %2251 = vmatprep.subr.bf16.mxu1 %v3220_v56  ;;  %v2342_v48 = vld [vmem:[%s3960_s4 + $0x150] sm:$0xff]  ;;  %v2357_v56 = vld [vmem:[%s3960_s4 + $0x1c8] sm:$0xff] }
 0x136   :  { %2786 = vmatprep.subr.mxu0 %v2331_v35  ;;  %v2341_v35 = vld [vmem:[%s3960_s4 + $0x148] sm:$0xff] }
 0x138   :  { %v1308_v51 = vpop.f32.mrf.mxu0  ;;  %2221 = vmatmul.mubr.bf16.vlgmr.msra.gmra.mxu0 %v3737_v10  ;;  %2252 = vmatpush2.bf16.msra.mxu1 %v3218_v25  ;;  %v2328_v10 = vld [vmem:[%s3960_s4 + $0xe0] sm:$0xff] }
 0x139   :  { %2787 = vmatpush3.msra.mxu0 %v2315_v49  ;;  %2253 = vmatprep.subr.bf16.mxu1 %v3226_v18  ;;  %v2356_v25 = vld [vmem:[%s3960_s4 + $0x1c0] sm:$0xff]  ;;  %v2355_v49 = vld [vmem:[%s3960_s4 + $0x1b8] sm:$0xff] }
 0x13a   :  { %v1310_v3 = vpop.f32.mrf.mxu0  ;;  %2788 = vmatprep.subr.mxu0 %v2330_v30  ;;  %v2340_v18 = vld [vmem:[%s3960_s4 + $0x140] sm:$0xff]  ;;  %v2339_v30 = vld [vmem:[%s3960_s4 + $0x138] sm:$0xff] }
 0x13b   :  { %2789 = vmatpush3.msra.mxu0 %v2314_v59  ;;  %v2338_v59 = vld [vmem:[%s3960_s4 + $0x130] sm:$0xff] }
 0x13c   :  { %v1312_v14 = vpop.f32.mrf.mxu0  ;;  %2790 = vmatprep.subr.mxu0 %v2329_v15  ;;  %2254 = vmatpush2.bf16.msra.mxu1 %v3224_v5 }
 0x13d   :  { %2791 = vmatpush3.msra.mxu0 %v2313_v4  ;;  %2255 = vmatprep.subr.bf16.mxu1 %v3232_v6  ;;  %v2353_v4 = vld [vmem:[%s3960_s4 + $0x1a8] sm:$0xff] }
 0x13e   :  { %v1313_v57 = vpop.f32.mrf.mxu0  ;;  %2792 = vmatprep.subr.mxu0 %v2328_v10  ;;  %v2337_v14 = vld [vmem:[%s3960_s4 + $0x128] sm:$0xff] }
 0x13f   :  { %2793 = vmatpush3.msra.mxu0 %v2312_v54 }
 0x140   :  { %2794 = vmatprep.subr.mxu0 %v2327_v40  ;;  %2256 = vmatpush2.bf16.msra.mxu1 %v3230_v61  ;;  %v2352_v61 = vld [vmem:[%s3960_s4 + $0x1a0] sm:$0xff] }
 0x141   :  { %2795 = vmatpush3.msra.mxu0 %v2311_v28  ;;  %2257 = vmatprep.subr.bf16.mxu1 %v3238_v55  ;;  %v2336_v55 = vld [vmem:[%s3960_s4 + $0x120] sm:$0xff]  ;;  %v2351_v28 = vld [vmem:[%s3960_s4 + $0x198] sm:$0xff] }
 0x142   :  { %2796 = vmatprep.subr.mxu0 %v2326_v0 }
 0x143   :  { %2797 = vmatpush3.msra.mxu0 %v2310_v47  ;;  %v2335_v47 = vld [vmem:[%s3960_s4 + $0x118] sm:$0xff] }
 0x144   :  { %2798 = vmatprep.subr.mxu0 %v2325_v9  ;;  %2258 = vmatpush2.bf16.msra.mxu1 %v3236_v63  ;;  %v2350_v63 = vld [vmem:[%s3960_s4 + $0x190] sm:$0xff] }
 0x145   :  { %2799 = vmatpush3.msra.mxu0 %v2309_v36  ;;  %2259 = vmatprep.subr.bf16.mxu1 %v3244_v21  ;;  %v2334_v21 = vld [vmem:[%s3960_s4 + $0x110] sm:$0xff]  ;;  %v2349_v36 = vld [vmem:[%s3960_s4 + $0x188] sm:$0xff] }
 0x146   :  { %2800 = vmatprep.subr.mxu0 %v2324_v8  ;;  %v2333_v8 = vld [vmem:[%s3960_s4 + $0x108] sm:$0xff] }
 0x147   :  { %2801 = vmatpush3.msra.mxu0 %v2308_v53  ;;  %v2348_v53 = vld [vmem:[%s3960_s4 + $0x180] sm:$0xff] }
 0x148   :  { %2802 = vmatprep.subr.mxu0 %v2323_v26  ;;  %2260 = vmatpush2.bf16.msra.mxu1 %v3242_v39  ;;  %v2332_v39 = vld [vmem:[%s3960_s4 + $0x100] sm:$0xff] }
 0x149   :  { %2803 = vmatpush3.msra.mxu0 %v2307_v41  ;;  %2821 = vmatprep.subr.mxu1 %v2363_v31 }
 0x14a   :  { %2804 = vmatprep.subr.mxu0 %v2322_v33 }
 0x14b   :  { %2805 = vmatpush3.msra.mxu0 %v2306_v7  ;;  %v1349_v19 = vpop.f32.mrf.mxu1  ;;  %2262 = vmatmul.mubr.bf16.vlgmr.msra.gmra.mxu1 %v3743_v16  ;;  %v2319_v16 = vld [vmem:[%s3960_s4 + $0x98] sm:$0xff] }
 0x14c   :  { %2806 = vmatprep.subr.mxu0 %v2321_v29  ;;  %v3815_v22 = vadd.f32 %v1349_v19, %v1308_v51  ;;  %2822 = vmatpush3.msra.mxu1 %v2347_v11  ;;  %v2354_v51 = vld [vmem:[%s3960_s4 + $0x1b0] sm:$0xff]  ;;  %v2272_v29 = vlaneseq }
 0x14d   :  { %2807 = vmatpush3.msra.mxu0 %v2305_v27  ;;  %v1351_v12 = vpop.f32.mrf.mxu1  ;;  %2823 = vmatprep.subr.mxu1 %v2362_v13 }
 0x14e   :  { %2808 = vmatprep.subr.mxu0 %v2320_v20  ;;  %v3823_v34 = vadd.f32 %v1351_v12, %v1310_v3  ;;  %2824 = vmatpush3.msra.mxu1 %v2346_v58  ;;  %v2273_v19 = vshrl.u32 %v2272_v29, 7  ;;  %v2270_v12 = vld [vmem:[%s3959_s3] sm:$0xf] }
 0x14f   :  { %2809 = vmatpush3.msra.mxu0 %v2304_v42  ;;  %v1353_v43 = vpop.f32.mrf.mxu1  ;;  %2825 = vmatprep.subr.mxu1 %v2361_v38 }
 0x150   :  { %2810 = vmatprep.subr.mxu0 %v2319_v16  ;;  %2826 = vmatpush3.msra.mxu1 %v2345_v1  ;;  %v2274_v27 = vsub.s32 0, %v2273_v19  ;;  %v2278_v42 = vsub.s32 1, %v2273_v19 }
 0x151   :  { %2811 = vmatpush3.msra.mxu0 %v2303_v24  ;;  %v1354_v44 = vpop.f32.mrf.mxu1  ;;  %2827 = vmatprep.subr.mxu1 %v2360_v62  ;;  %v2282_v62 = vsub.s32 2, %v2273_v19 }
 0x152   :  { %2812 = vmatprep.subr.mxu0 %v2318_v37  ;;  %2828 = vmatpush3.msra.mxu1 %v2344_v2  ;;  %v2275_v24 = vrot.slane %v2270_v12, %v2274_v27  ;;  %v2279_v44 = vrot.slane %v2270_v12, %v2278_v42  ;;  %v2286_v2 = vsub.s32 3, %v2273_v19 }
 0x153   :  { %2813 = vmatpush3.msra.mxu0 %v2302_v23  ;;  %2829 = vmatprep.subr.mxu1 %v2359_v32 }
 0x154   :  { %2814 = vmatprep.subr.mxu0 %v2317_v45  ;;  %2830 = vmatpush3.msra.mxu1 %v2343_v17 }
 0x155   :  { %2815 = vmatpush3.msra.mxu0 %v2301_v60  ;;  %2831 = vmatprep.subr.mxu1 %v2358_v46  ;;  %v2283_v46 = vrot.slane %v2270_v12, %v2282_v62 }
 0x156   :  { %2816 = vmatprep.subr.mxu0 %v2316_v50  ;;  %2832 = vmatpush3.msra.mxu1 %v2342_v48 }
 0x157   :  { %2817 = vmatpush3.msra.mxu0 %v2300_v52  ;;  %2833 = vmatprep.subr.mxu1 %v2357_v56  ;;  %v2287_v56 = vrot.slane %v2270_v12, %v2286_v2 }
 0x158   :  { %2834 = vmatpush3.msra.mxu1 %v2341_v35 }
 0x159   :  { %2835 = vmatprep.subr.mxu1 %v2356_v25 }
 0x15a   :  { %2836 = vmatpush3.msra.mxu1 %v2340_v18 }
 0x15b   :  { %2837 = vmatprep.subr.mxu1 %v2355_v49 }
 0x15c   :  { %2838 = vmatpush3.msra.mxu1 %v2339_v30 }
 0x15d   :  { %2839 = vmatprep.subr.mxu1 %v2354_v51 }
 0x15e   :  { %2840 = vmatpush3.msra.mxu1 %v2338_v59 }
 0x15f   :  { %2841 = vmatprep.subr.mxu1 %v2353_v4  ;;  %v2785_v4 = vld [vmem:[%s3961_s5] ss:$0 sm:$0xff] }
 0x160   :  { %2842 = vmatpush3.msra.mxu1 %v2337_v14 }
 0x161   :  { %2843 = vmatprep.subr.mxu1 %v2352_v61 }
 0x162   :  { %2844 = vmatpush3.msra.mxu1 %v2336_v55 }
 0x163   :  { %2845 = vmatprep.subr.mxu1 %v2351_v28 }
 0x164   :  { %2846 = vmatpush3.msra.mxu1 %v2335_v47 }
 0x165   :  { %2847 = vmatprep.subr.mxu1 %v2350_v63 }
 0x166   :  { %2848 = vmatpush3.msra.mxu1 %v2334_v21 }
 0x167   :  { %2849 = vmatprep.subr.mxu1 %v2349_v36 }
 0x168   :  { %2850 = vmatpush3.msra.mxu1 %v2333_v8 }
 0x169   :  { %2851 = vmatprep.subr.mxu1 %v2348_v53 }
 0x16a   :  { %2852 = vmatpush3.msra.mxu1 %v2332_v39 }
 0x178   :  { %v1390_v5 = vpop.f32.mrf.mxu0 }
 0x17a   :  { %v1392_v15 = vpop.f32.mrf.mxu0 }
 0x17c   :  { %v1394_v6 = vpop.f32.mrf.mxu0 }
 0x17e   :  { %v1395_v3 = vpop.f32.mrf.mxu0 }
 0x18b   :  { %v1431_v10 = vpop.f32.mrf.mxu1 }
 0x18c   :  { %v1432_v54 = vadd.f32 %v1431_v10, %v1390_v5 }
 0x18d   :  { %v1433_v40 = vpop.f32.mrf.mxu1 }
 0x18e   :  { %v1434_v57 = vadd.f32 %v1433_v40, %v1392_v15 }
 0x18f   :  { %v1435_v0 = vpop.f32.mrf.mxu1 }
 0x191   :  { %v1436_v9 = vpop.f32.mrf.mxu1 }
 0x1b8   :  { %v2140_v26 = vpop.f32.mrf.mxu0 }
 0x1b9   :  { %v2141_v20 = vadd.f32 %v2140_v26, %v3815_v22 }
 0x1ba   :  { %v2142_v41 = vpop.f32.mrf.mxu0 }
 0x1bb   :  { %v2143_v16 = vadd.f32 %v2142_v41, %v3823_v34 }
 0x1bc   :  { %v2144_v33 = vpop.f32.mrf.mxu0 }
 0x1be   :  { %v2145_v7 = vpop.f32.mrf.mxu0 }
 0x1cb   :  { %v2181_v43 = vpop.f32.mrf.mxu1 }
 0x1cc   :  { %v2182_v37 = vadd.f32 %v2181_v43, %v2141_v20 }
 0x1cd   :  { %v2183_v23 = vpop.f32.mrf.mxu1 }
 0x1ce   :  { %v2184_v45 = vadd.f32 %v2183_v23, %v2143_v16  ;;  %v2292_v60 = vadd.f32 %v2275_v24, %v2182_v37 }
 0x1cf   :  { %v2185_v50 = vpop.f32.mrf.mxu1 }
 0x1d0   :  { %v2293_v52 = vadd.f32 %v2279_v44, %v2184_v45  ;;  %v2296_v13 = vmax.f32 %v2292_v60, 0.0 }
 0x1d1   :  { %v2186_v31 = vpop.f32.mrf.mxu1 }
 0x1d2   :  { %v2297_v11 = vmax.f32 %v2293_v52, 0.0 }
 0x1d4   :  { %2435 = vmatprep.mubr.f32.mxu0 %v2297_v11 }
 0x1d5   :  { %2436 = vmatmul.mubr.f32.vlgmr.msra.gmra.mxu0 %v2296_v13 }
 0x1f8   :  { %v2222_v22 = vpop.f32.mrf.mxu0 }
 0x1f9   :  { %v2223_v34 = vadd.f32 %v2222_v22, %v1432_v54 }
 0x1fa   :  { %v2224_v58 = vpop.f32.mrf.mxu0 }
 0x1fb   :  { %v2225_v32 = vadd.f32 %v2224_v58, %v1434_v57 }
 0x1fc   :  { %v2226_v38 = vpop.f32.mrf.mxu0 }
 0x1fe   :  { %v2227_v1 = vpop.f32.mrf.mxu0 }
 0x20b   :  { %v2263_v17 = vpop.f32.mrf.mxu1 }
 0x20c   :  { %v2264_v48 = vadd.f32 %v2263_v17, %v2223_v34 }
 0x20d   :  { %v2265_v35 = vpop.f32.mrf.mxu1 }
 0x20e   :  { %v2266_v25 = vadd.f32 %v2265_v35, %v2225_v32  ;;  %v2294_v18 = vadd.f32 %v2283_v46, %v2264_v48 }
 0x20f   :  { %v2267_v49 = vpop.f32.mrf.mxu1 }
 0x210   :  { %v2295_v30 = vadd.f32 %v2287_v56, %v2266_v25  ;;  %v2298_v5 = vmax.f32 %v2294_v18, 0.0 }
 0x211   :  { %v2268_v51 = vpop.f32.mrf.mxu1 }
 0x212   :  { %v2299_v59 = vmax.f32 %v2295_v30, 0.0 }
 0x214   :  { %2505 = vmatprep.mubr.f32.mxu1 %v2299_v59 }
 0x215   :  { %2506 = vmatmul.mubr.f32.vlgmr.msra.gmra.mxu1 %v2298_v5 }
 0x295   :  { %v2818_v15 = vpop.f32.mrf.mxu0 }
 0x297   :  { %v2819_v6 = vpop.f32.mrf.mxu0 }
 0x298   :  { %v2820_v3 = vadd.f32 %v2819_v6, %v2818_v15 }
 0x29a   :  { %v2438_v54 = vadd.f32 %v2820_v3, %v2785_v4 }
 0x2d5   :  { %v2853_v10 = vpop.f32.mrf.mxu1 }
 0x2d7   :  { %v2854_v14 = vpop.f32.mrf.mxu1 }
 0x2d8   :  { %v2855_v61 = vadd.f32 %v2854_v14, %v2853_v10 }
 0x2da   :  { %v2508_v40 = vadd.f32 %v2855_v61, %v2438_v54 }
 0x2dc   :  { %2512 = vst.msk [vmem:[#allocation7] sm:$0x3] %vm2511_vm1, %v2508_v40 }
 0x2dd   :  { %3296 = shalt.err (!%p3293_p0)
}
 0x2de   :  { %2522 = dma.vmem_to_hbm [thread:$0]  %s2520_s27, 32, %s3962_s6, [#allocation4]  }
 0x2df   :  { %3309 = dma.done.wait [#allocation4], 32  }
 0x2e0   :  { %3310 = vsyncadd [#allocation4], 4294967264 }
 0x2e1   :  { %2526 = vsyncpa [#allocation3], 1 }
 0x2e2   :  { %2527 = vsyncpa [#allocation6], 1 }
 0x2e3   :  { %2528 = vsyncpa [#allocation4], 1 }

</bundles_post_ra>
